<compile_context>
chip_gen: v5e
topology: v5e:2x2
jax: 0.10.0
libtpu: 0.0.40
codegen_flags: <defaults>
</compile_context>

<pallas_src>
import functools
import math

import jax
import jax.numpy as jnp
from jax.experimental import pallas as pl
from jax.experimental.pallas import tpu as pltpu


# ----------------------------------------------------------------------------
# small helpers
# ----------------------------------------------------------------------------

def _round_up(x, m):
    return (x + m - 1) // m * m


def _cdiv(a, b):
    return -(-a // b)


def _pick_rows(m):
    """Pick a row-tile TR dividing m (or a padded m) for elementwise kernels."""
    for t in (1024, 512, 256, 128, 64, 32, 16, 8):
        if m % t == 0:
            return t, m
    if m <= 1024:
        mp = _round_up(m, 8)
        return mp, mp
    return 512, _round_up(m, 512)


def _pick_tm(K, N, budget=12 * 1024 * 1024):
    """Largest GEMM M-tile whose double-buffered VMEM footprint fits budget."""
    for tm in (1024, 512, 256, 128):
        vmem = 2 * tm * K * 2 + 2 * K * N * 2 + 2 * tm * N * 4
        if vmem <= budget:
            return tm
    return 64


def _pick_conv_tm(cin, cout, budget=12 * 1024 * 1024):
    """Largest implicit-GEMM row-tile cap fitting the VMEM budget."""
    for tm in (1024, 512, 256):
        vmem = (2 * 2 * tm * cin * 2      # alo/ahi, double-buffered, bf16
                + 2 * tm * cin * 2        # cat scratch
                + 2 * 9 * cin * cout * 2  # resident tap weights (x2 buffers)
                + 2 * tm * cout * 4)      # f32 output, double-buffered
        if vmem <= budget:
            return tm
    return 128


_VMEM = pl.BlockSpec(memory_space=pltpu.MemorySpace.VMEM)
_VMEM_32M = 32 * 1024 * 1024


# ----------------------------------------------------------------------------
# Pallas kernels
# ----------------------------------------------------------------------------

def _matmul_kernel(a_ref, b_ref, o_ref):
    """One M-tile of (M,K)@(K,N): full-K, full-N block, bf16 -> f32 on MXU."""
    o_ref[...] = jnp.dot(a_ref[...], b_ref[...],
                         preferred_element_type=jnp.float32)


def _conv3x3_s1_kernel(alo_ref, ahi_ref, w_ref, o_ref, cat_ref, *, offs, tm):
    """Implicit-GEMM 3x3 stride-1 conv for one row-tile of one image.

    alo/ahi: (1, tm, Cin) consecutive bf16 row tiles of the per-image flat
             padded input (ahi provides the halo rows of the next tile).
    w_ref:   (9, Cin, Cout) bf16 tap weights (constant index_map, resident).
    Each tap t multiplies the rows shifted by the static offset offs[t].
    """
    cat_ref[0:tm, :] = alo_ref[0]
    cat_ref[tm:2 * tm, :] = ahi_ref[0]
    acc = None
    for t, off in enumerate(offs):          # static 9-tap unrolled loop
        a = cat_ref[pl.ds(off, tm), :]      # static sublane offset
        p = jnp.dot(a, w_ref[t], preferred_element_type=jnp.float32)
        acc = p if acc is None else acc + p
    o_ref[0] = acc


def _bn_stats_kernel(x_ref, sum_ref, sq_ref):
    """Tiled per-channel sum / sum-of-squares reduction (grid axis = rows)."""
    @pl.when(pl.program_id(0) == 0)
    def _():
        sum_ref[...] = jnp.zeros_like(sum_ref)
        sq_ref[...] = jnp.zeros_like(sq_ref)
    x = x_ref[...]
    sum_ref[...] += jnp.sum(x, axis=0, keepdims=True)
    sq_ref[...] += jnp.sum(x * x, axis=0, keepdims=True)


def _bn_norm_kernel(x_ref, scale_ref, shift_ref, o_ref, *, relu):
    y = x_ref[...] * scale_ref[...] + shift_ref[...]
    if relu:
        y = jnp.maximum(y, 0.0)
    o_ref[...] = y.astype(o_ref.dtype)


def _bn_norm_res_relu_kernel(x_ref, res_ref, scale_ref, shift_ref, o_ref):
    """BN affine + residual add + ReLU fused in one pass over the tensor."""
    y = x_ref[...] * scale_ref[...] + shift_ref[...] + res_ref[...]
    o_ref[...] = jnp.maximum(y, 0.0).astype(o_ref.dtype)


def _maxpool_kernel(ee_ref, eo_ref, oe_ref, oo_ref, o_ref):
    """3x3 stride-2 max pool from 4 parity planes (contiguous slices only)."""
    ee = ee_ref[0]
    eo = eo_ref[0]
    oe = oe_ref[0]
    oo = oo_ref[0]
    oh = ee.shape[0] - 1
    ow = ee.shape[1] - 1
    r = ee[:oh, :ow]
    r = jnp.maximum(r, eo[:oh, :ow])
    r = jnp.maximum(r, ee[:oh, 1:])
    r = jnp.maximum(r, oe[:oh, :ow])
    r = jnp.maximum(r, oo[:oh, :ow])
    r = jnp.maximum(r, oe[:oh, 1:])
    r = jnp.maximum(r, ee[1:, :ow])
    r = jnp.maximum(r, eo[1:, :ow])
    r = jnp.maximum(r, ee[1:, 1:])
    o_ref[0] = r


def _global_avg_kernel(x_ref, o_ref):
    # x: (N, H*W, C) -> mean over the spatial axis (tiny tensor at this point).
    o_ref[...] = jnp.mean(x_ref[...], axis=1)


# ----------------------------------------------------------------------------
# pallas_call wrappers
# ----------------------------------------------------------------------------

def matmul(a, b):
    """(M,K)@(K,N) -> f32. bf16 operands, full-K/full-N resident-weight blocks."""
    M, K = a.shape
    K2, N = b.shape
    assert K == K2
    a = a.astype(jnp.bfloat16)
    b = b.astype(jnp.bfloat16)
    TM = _pick_tm(K, N)
    if M < TM:
        TM = _round_up(M, 8)
    Mp = _round_up(M, TM)
    a_p = a if Mp == M else jnp.pad(a, ((0, Mp - M), (0, 0)))
    out = pl.pallas_call(
        _matmul_kernel,
        out_shape=jax.ShapeDtypeStruct((Mp, N), jnp.float32),
        grid=(Mp // TM,),
        in_specs=[
            pl.BlockSpec((TM, K), lambda i: (i, 0)),
            pl.BlockSpec((K, N), lambda i: (0, 0)),   # weights resident
        ],
        out_specs=pl.BlockSpec((TM, N), lambda i: (i, 0)),
        compiler_params=pltpu.CompilerParams(
            dimension_semantics=("parallel",),
            vmem_limit_bytes=_VMEM_32M),
    )(a_p, b)
    return out if Mp == M else out[:M]


def conv3x3_s1(x, w):
    """3x3 stride-1 pad-1 conv on NHWC via per-image implicit GEMM."""
    N, H, W, Cin = x.shape
    Cout = w.shape[-1]
    Hp, Wp = H + 2, W + 2
    rows_img = H * Wp                    # output rows per image (cols kept padded)
    max_off = 2 * Wp + 2                 # largest static tap offset

    cap = _pick_conv_tm(Cin, Cout)
    nt = _cdiv(rows_img, cap)            # row tiles per image (balanced)
    TM = _round_up(_cdiv(rows_img, nt), 8)
    TM = max(TM, _round_up(max_off, 8))  # halo must fit within one extra tile
    nt = _cdiv(rows_img, TM)
    RP = (nt + 1) * TM                   # per-image padded input rows (halo tile)

    xp = jnp.pad(x, ((0, 0), (1, 1), (1, 1), (0, 0))).astype(jnp.bfloat16)
    xflat = xp.reshape(N, Hp * Wp, Cin)
    xflat = jnp.pad(xflat, ((0, 0), (0, RP - Hp * Wp), (0, 0)))
    wt = w.reshape(9, Cin, Cout).astype(jnp.bfloat16)
    offs = tuple(di * Wp + dj for di in range(3) for dj in range(3))

    zf = pl.pallas_call(
        functools.partial(_conv3x3_s1_kernel, offs=offs, tm=TM),
        out_shape=jax.ShapeDtypeStruct((N, nt * TM, Cout), jnp.float32),
        grid=(N, nt),
        in_specs=[
            pl.BlockSpec((1, TM, Cin), lambda n, t: (n, t, 0)),       # rows
            pl.BlockSpec((1, TM, Cin), lambda n, t: (n, t + 1, 0)),   # halo
            pl.BlockSpec((9, Cin, Cout), lambda n, t: (0, 0, 0)),     # resident W
        ],
        out_specs=pl.BlockSpec((1, TM, Cout), lambda n, t: (n, t, 0)),
        scratch_shapes=[pltpu.VMEM((2 * TM, Cin), jnp.bfloat16)],
        compiler_params=pltpu.CompilerParams(
            dimension_semantics=("parallel", "parallel"),
            vmem_limit_bytes=_VMEM_32M),
    )(xflat, xflat, wt)

    return zf[:, :rows_img, :].reshape(N, H, Wp, Cout)[:, :, :W, :]


def conv_im2col(x, w, stride, padding):
    """Fallback conv (stem 7x7/s2, 3x3/s2, 1x1/s2): im2col + Pallas GEMM."""
    N, H, W, Cin = x.shape
    KH, KW, _, Cout = w.shape
    s, p = stride, padding
    xp = jnp.pad(x, ((0, 0), (p, p), (p, p), (0, 0)))
    OH = (H + 2 * p - KH) // s + 1
    OW = (W + 2 * p - KW) // s + 1
    if KH == 1 and KW == 1:
        a = xp[:, ::s, ::s, :][:, :OH, :OW, :].reshape(N * OH * OW, Cin)
    else:
        patches = [xp[:, di:di + s * OH:s, dj:dj + s * OW:s, :]
                   for di in range(KH) for dj in range(KW)]
        a = jnp.concatenate(patches, axis=-1).reshape(N * OH * OW, KH * KW * Cin)
    bmat = w.reshape(KH * KW * Cin, Cout)
    y = matmul(a, bmat)
    return y.reshape(N, OH, OW, Cout)


def conv2d(x, w, stride, padding):
    KH, KW, _, _ = w.shape
    if KH == 3 and KW == 3 and stride == 1 and padding == 1:
        return conv3x3_s1(x, w)
    return conv_im2col(x, w, stride, padding)


def batchnorm_act(x, gamma, beta, *, relu, residual=None, eps=1e-5,
                  out_dtype=jnp.float32):
    """Training-mode BatchNorm (batch stats, biased var) + optional fused
    residual add + ReLU.  Two tiled Pallas passes: stats reduction, normalize.
    `out_dtype=bf16` is used when the only consumer is a conv (which casts to
    bf16 anyway) -> bit-identical result, half the HBM write+read."""
    N, H, W, C = x.shape
    M = N * H * W

    # Fold rows so the lane dim is 128-dense when C < 128 (e.g. C = 64 -> 2x).
    f = 1
    if C < 128 and 128 % C == 0 and M % (128 // C) == 0:
        f = 128 // C
    Mf, Cf = M // f, C * f

    x2 = x.reshape(Mf, Cf)
    res2 = residual.reshape(Mf, Cf) if residual is not None else None

    TR, Mp = _pick_rows(Mf)
    pad = Mp - Mf
    if pad:
        x2 = jnp.pad(x2, ((0, pad), (0, 0)))
        if res2 is not None:
            res2 = jnp.pad(res2, ((0, pad), (0, 0)))
    grid = (Mp // TR,)

    # Pass 1: per-channel sum / sumsq (zero-padded rows don't bias the sums).
    ssum, ssq = pl.pallas_call(
        _bn_stats_kernel,
        out_shape=(jax.ShapeDtypeStruct((1, Cf), jnp.float32),
                   jax.ShapeDtypeStruct((1, Cf), jnp.float32)),
        grid=grid,
        in_specs=[pl.BlockSpec((TR, Cf), lambda i: (i, 0))],
        out_specs=(pl.BlockSpec((1, Cf), lambda i: (0, 0)),
                   pl.BlockSpec((1, Cf), lambda i: (0, 0))),
        compiler_params=pltpu.CompilerParams(
            dimension_semantics=("arbitrary",)),
    )(x2)

    ch_sum = ssum.reshape(f, C).sum(axis=0)
    ch_sq = ssq.reshape(f, C).sum(axis=0)
    mean = ch_sum / M
    var = jnp.maximum(ch_sq / M - mean * mean, 0.0)     # biased variance
    scale = gamma * jax.lax.rsqrt(var + eps)
    shift = beta - mean * scale
    scale_f = jnp.tile(scale, (f,)).reshape(1, Cf)
    shift_f = jnp.tile(shift, (f,)).reshape(1, Cf)

    # Pass 2: normalize (+ residual + ReLU) in one tiled sweep.
    if residual is None:
        y = pl.pallas_call(
            functools.partial(_bn_norm_kernel, relu=relu),
            out_shape=jax.ShapeDtypeStruct((Mp, Cf), out_dtype),
            grid=grid,
            in_specs=[pl.BlockSpec((TR, Cf), lambda i: (i, 0)),
                      pl.BlockSpec((1, Cf), lambda i: (0, 0)),
                      pl.BlockSpec((1, Cf), lambda i: (0, 0))],
            out_specs=pl.BlockSpec((TR, Cf), lambda i: (i, 0)),
            compiler_params=pltpu.CompilerParams(
                dimension_semantics=("parallel",)),
        )(x2, scale_f, shift_f)
    else:
        y = pl.pallas_call(
            _bn_norm_res_relu_kernel,
            out_shape=jax.ShapeDtypeStruct((Mp, Cf), out_dtype),
            grid=grid,
            in_specs=[pl.BlockSpec((TR, Cf), lambda i: (i, 0)),
                      pl.BlockSpec((TR, Cf), lambda i: (i, 0)),
                      pl.BlockSpec((1, Cf), lambda i: (0, 0)),
                      pl.BlockSpec((1, Cf), lambda i: (0, 0))],
            out_specs=pl.BlockSpec((TR, Cf), lambda i: (i, 0)),
            compiler_params=pltpu.CompilerParams(
                dimension_semantics=("parallel",)),
        )(x2, res2, scale_f, shift_f)

    if pad:
        y = y[:Mf]
    return y.reshape(N, H, W, C)


def maxpool_3x3_s2(x):
    """MaxPool2d(kernel=3, stride=2, padding=1) on NHWC via 4 parity planes."""
    N, H, W, C = x.shape
    assert H % 2 == 0 and W % 2 == 0
    OH, OW = H // 2, W // 2
    xp = jnp.pad(x, ((0, 0), (1, 1), (1, 1), (0, 0)),
                 constant_values=-jnp.inf)
    ee = xp[:, 0::2, 0::2, :]
    eo = xp[:, 0::2, 1::2, :]
    oe = xp[:, 1::2, 0::2, :]
    oo = xp[:, 1::2, 1::2, :]
    in_spec = pl.BlockSpec((1, OH + 1, OW + 1, C), lambda n: (n, 0, 0, 0))
    return pl.pallas_call(
        _maxpool_kernel,
        out_shape=jax.ShapeDtypeStruct((N, OH, OW, C), x.dtype),
        grid=(N,),
        in_specs=[in_spec, in_spec, in_spec, in_spec],
        out_specs=pl.BlockSpec((1, OH, OW, C), lambda n: (n, 0, 0, 0)),
        compiler_params=pltpu.CompilerParams(
            dimension_semantics=("parallel",)),
    )(ee, eo, oe, oo)


def global_avgpool(x):
    """AdaptiveAvgPool2d((1,1)) + flatten: NHWC -> (N, C). Tiny tensor."""
    N, H, W, C = x.shape
    xr = x.reshape(N, H * W, C)
    return pl.pallas_call(
        _global_avg_kernel,
        out_shape=jax.ShapeDtypeStruct((N, C), x.dtype),
        in_specs=[_VMEM],
        out_specs=_VMEM,
    )(xr)


# ----------------------------------------------------------------------------
# ResNet18 parameters (deterministic synthetic init) and forward
# ----------------------------------------------------------------------------

def _init_conv(key, kh, kw, cin, cout):
    fan_in = kh * kw * cin
    return (jax.random.normal(key, (kh, kw, cin, cout), jnp.float32)
            * math.sqrt(2.0 / fan_in))


def _init_bn(key, c):
    kg, kb = jax.random.split(key)
    gamma = 1.0 + 0.1 * jax.random.normal(kg, (c,), jnp.float32)
    beta = 0.1 * jax.random.normal(kb, (c,), jnp.float32)
    return gamma, beta


def init_resnet18(key):
    keys = iter(jax.random.split(key, 128))
    params = {
        "conv1": _init_conv(next(keys), 7, 7, 3, 64),
        "bn1": _init_bn(next(keys), 64),
    }
    cfg = [("layer1", 64, 64, 1), ("layer2", 64, 128, 2),
           ("layer3", 128, 256, 2), ("layer4", 256, 512, 2)]
    for name, cin, cout, stride in cfg:
        blocks = []
        for b in range(2):
            s = stride if b == 0 else 1
            in_c = cin if b == 0 else cout
            blk = {
                "stride": s,
                "conv1": _init_conv(next(keys), 3, 3, in_c, cout),
                "bn1": _init_bn(next(keys), cout),
                "conv2": _init_conv(next(keys), 3, 3, cout, cout),
                "bn2": _init_bn(next(keys), cout),
            }
            if s != 1 or in_c != cout:
                blk["down_conv"] = _init_conv(next(keys), 1, 1, in_c, cout)
                blk["down_bn"] = _init_bn(next(keys), cout)
            blocks.append(blk)
        params[name] = blocks
    return params


def basic_block(x, blk):
    s = blk["stride"]
    out = conv2d(x, blk["conv1"], s, 1)
    # BN1 output feeds only conv2 (which casts to bf16 anyway) -> write bf16.
    out = batchnorm_act(out, *blk["bn1"], relu=True, out_dtype=jnp.bfloat16)
    out = conv2d(out, blk["conv2"], 1, 1)
    if "down_conv" in blk:
        identity = conv2d(x, blk["down_conv"], s, 0)
        identity = batchnorm_act(identity, *blk["down_bn"], relu=False)
    else:
        identity = x
    # BN2 + residual add + ReLU fused in one Pallas pass.
    return batchnorm_act(out, *blk["bn2"], relu=True, residual=identity)


def resnet18_embedding(params, x_nchw, type=None):
    """Matches ResNet18Embedding.forward; default returns (embedding, x_prime)."""
    x = jnp.transpose(x_nchw.astype(jnp.float32), (0, 2, 3, 1))  # NCHW -> NHWC
    x = conv2d(x, params["conv1"], 2, 3)
    x = batchnorm_act(x, *params["bn1"], relu=True)
    x = maxpool_3x3_s2(x)
    for name in ("layer1", "layer2", "layer3", "layer4"):
        for blk in params[name]:
            x = basic_block(x, blk)
    x_prime = jnp.transpose(x, (0, 3, 1, 2))  # feature map back to NCHW
    if type == "feature_map":
        return x_prime
    emb = global_avgpool(x)  # (N, 512) == avgpool + view(N, -1)
    if type == "embedding":
        return emb
    return emb, x_prime


# ----------------------------------------------------------------------------

if __name__ == "__main__":
    key = jax.random.PRNGKey(0)
    kp, kx = jax.random.split(key)
    params = init_resnet18(kp)

    # Small example input consistent with a 3-channel ResNet18 stem (NCHW).
    x = jax.random.normal(kx, (2, 3, 64, 64), jnp.float32)

    emb, fmap = resnet18_embedding(params, x)
    jax.block_until_ready((emb, fmap))

    assert emb.shape == (2, 512), emb.shape
    assert fmap.shape == (2, 512, 2, 2), fmap.shape
    assert bool(jnp.all(jnp.isfinite(emb))) and bool(jnp.all(jnp.isfinite(fmap)))
    print("KERNEL_OK")
</pallas_src>

<mosaic_0001>
module attributes {stable_mosaic.version = 11 : i64} {
  func.func @_matmul_kernel(%arg0: i32, %arg1: memref<1024x147xbf16, #tpu.memory_space<vmem>>, %arg2: memref<147x64xbf16, #tpu.memory_space<vmem>>, %arg3: memref<1024x64xf32, #tpu.memory_space<vmem>>) attributes {dimension_semantics = [#tpu.dimension_semantics<parallel>], iteration_bounds = array<i64: 2>, scalar_prefetch = 0 : i64, scratch_operands = 0 : i64, tpu.core_type = #tpu.core_type<tc>, window_params = [{transform_indices = @transform_0, window_bounds = array<i64: 1024, 147>}, {pipeline_mode = #tpu.pipeline_mode<synchronous>, transform_indices = @transform_1, window_bounds = array<i64: 147, 64>}, {transform_indices = @transform_2, window_bounds = array<i64: 1024, 64>}]} {
    %c0 = arith.constant 0 : index
    %c0_0 = arith.constant 0 : index
    %0 = vector.load %arg1[%c0, %c0_0] : memref<1024x147xbf16, #tpu.memory_space<vmem>>, vector<1024x147xbf16>
    %c0_1 = arith.constant 0 : index
    %c0_2 = arith.constant 0 : index
    %1 = vector.load %arg2[%c0_1, %c0_2] : memref<147x64xbf16, #tpu.memory_space<vmem>>, vector<147x64xbf16>
    %cst = arith.constant dense<0.000000e+00> : vector<1024x64xf32>
    %2 = tpu.matmul %0, %1, %cst {dimension_numbers = #tpu.dot_dimension_numbers<[1], [0], [0], [1], [0, 0, 1, 1], [], []>} : vector<1024x147xbf16>, vector<147x64xbf16>, vector<1024x64xf32> -> vector<1024x64xf32>
    %c0_3 = arith.constant 0 : index
    %c0_4 = arith.constant 0 : index
    %3 = vector.load %arg3[%c0_3, %c0_4] : memref<1024x64xf32, #tpu.memory_space<vmem>>, vector<1024x64xf32>
    tpu.vector_store %arg3[%c0_3, %c0_4], %2 {strides = array<i32>} : memref<1024x64xf32, #tpu.memory_space<vmem>>, vector<1024x64xf32>,
    return
  }
  func.func @transform_0(%arg0: i32) -> (i32, i32) {
    %c0_i32 = arith.constant 0 : i32
    %c0_i32_0 = arith.constant 0 : i32
    return %arg0, %c0_i32 : i32, i32
  }
  func.func @transform_1(%arg0: i32) -> (i32, i32) {
    %c0_i32 = arith.constant 0 : i32
    %c0_i32_0 = arith.constant 0 : i32
    %c0_i32_1 = arith.constant 0 : i32
    return %c0_i32, %c0_i32_0 : i32, i32
  }
  func.func @transform_2(%arg0: i32) -> (i32, i32) {
    %c0_i32 = arith.constant 0 : i32
    %c0_i32_0 = arith.constant 0 : i32
    return %arg0, %c0_i32 : i32, i32
  }
}

</mosaic_0001>

<bundles_post_ra>
// kernel: tpu_custom_call.1
= control target key start
LH: loop header
LB: loop body
LE: loop exit
PB: predicated region body
PF: predicated region fallthrough
CT: control target
= control target key end

     0   :  { %s2779_s9 = smov 0   ;;  %s3545_s0 = inlined_call_operand.vmem [shape: bf16[2048,147], index: 0, kind: input, shape index: {}]   ;;  %s3546_s1 = inlined_call_operand.vmem [shape: bf16[147,64], index: 1, kind: input, shape index: {}]   ;;  %s3547_s2 = inlined_call_operand.vmem [shape: f32[2048,64], index: 2, kind: output, shape index: {}]  }
   0x1 LB: > { %s1974_s10 = sadd.s32 4294967295, %s2761_s9   ;;  %p1978_p0 = scmp.ge.s32.totalorder %s2761_s9, 1  ;;  %s2761_s9 = sphi %s2779_s9, %s12_s9  }
   0x2   : > { %p114_p1 = scmp.lt.s32.totalorder %s2761_s9, 3 }
   0x4   : > { %p115_p2 = pnand %p1978_p0, %p114_p1 }
   0x5   : > { %s1979_s15 = sshll.u32 (!%p115_p2), %s1974_s10, 7 }
   0x6   : > { %118 = sbr.rel (%p115_p2) target bundleno = 682 (0x2aa), region = 28  ;;  %p138_p3 = scmp.lt.s32.totalorder (!%p115_p2), %s1979_s15, 255 }
   0xb   : > { %v2734_v0 = vld [vmem:[%s3546_s1 + $0x38] sm:$0xff]  ;;  %v297_v1 = vld [vmem:[%s3546_s1 + $0x48] sm:$0x3]  ;;  %vm1124_vm0 = vcmask 1040384   ;;  %vm1125_vm1 = vcmask 1041408   ;;  %v2733_v3 = vld [vmem:[%s3546_s1 + $0x30] sm:$0xff] }
   0xc   : > { %v911_v2 = vunpack.c.l.b16 %v297_v1  ;;  %1131 = vmatpush.bf16.msra.mxu0 %v2734_v0  ;;  %2736 = vmatpush.bf16.msra.mxu2 %v2734_v0  ;;  %v2763_v4 = vmov 65535   ;;  %s3549_s15 = smov (!%p138_p3, %s1979_s15), 255  ;;  %v2732_v9 = vld [vmem:[%s3546_s1 + $0x28] sm:$0xff]  ;;  %v2735_v10 = vld [vmem:[%s3546_s1 + $0x40] sm:$0xff]  ;;  %vm931_vm2 = vcmask 154624   ;;  %v2730_v18 = vld [vmem:[%s3546_s1 + $0x18] sm:$0xff] }
   0xd   : > { %v1126_v5 = vsel %vm1124_vm0, 4294967295, %v2763_v4  ;;  %s2598_s20 = sshll.u32 %s3549_s15, 3  ;;  %v2731_v14 = vld [vmem:[%s3546_s1 + $0x20] sm:$0xff]  ;;  %v2729_v19 = vld [vmem:[%s3546_s1 + $0x10] sm:$0xff]  ;;  %v2728_v20 = vld [vmem:[%s3546_s1 + $0x8] sm:$0xff]  ;;  %vm1789_vm3 = vcmask 523264  }
   0xe   : > { %v921_v6 = vpack.c.b16 %v911_v2, %v911_v2  ;;  %v1127_v7 = vsel %vm1125_vm1, %v1126_v5, 0  ;;  %s2810_s25 = scalar_lea.vmem %s3545_s0, %s2598_s20  ;;  %v2727_v26 = vld [vmem:[%s3546_s1] sm:$0xff]  ;;  %s2929_s11 = scalar_lea.vmem %s3547_s2, %s2598_s20 }
   0xf   : > { %v2599_v11 = vld [vmem:[%s2810_s25 + $0x4] sm:$0xf]  ;;  %v1988_v12 = vld [vmem:[%s2810_s25 + $0x8] sm:$0xf0]  ;;  %v2665_v15 = vld [vmem:[%s2810_s25 + $0x214] sm:$0xf] }
  0x10   : > { %v1129_v8 = vand.u32 %v1127_v7, %v921_v6  ;;  %1132 = vmatpush.bf16.msra.mxu0 %v2733_v3  ;;  %2737 = vmatpush.bf16.msra.mxu2 %v2733_v3  ;;  %v1991_v13 = vor.u32 %v2599_v11, %v1988_v12  ;;  %v2252_v16 = vld [vmem:[%s2810_s25 + $0x218] sm:$0xf0]  ;;  %v2601_v21 = vld [vmem:[%s2810_s25 + $0x14] sm:$0xf]  ;;  %v2667_v23 = vld [vmem:[%s2810_s25 + $0x224] sm:$0xf] }
  0x11   : > { %v2255_v17 = vor.u32 %v2665_v15, %v2252_v16  ;;  %v1996_v22 = vld [vmem:[%s2810_s25 + $0x18] sm:$0xf0]  ;;  %v2260_v24 = vld [vmem:[%s2810_s25 + $0x228] sm:$0xf0]  ;;  %v1986_v27 = vld [vmem:[%s2810_s25] sm:$0xf] }
  0x12   : > { %1466 = vmatpush.bf16.msra.mxu1 %v1129_v8  ;;  %2744 = vmatpush.bf16.msra.mxu3 %v1129_v8  ;;  %v1999_v25 = vor.u32 %v2601_v21, %v1996_v22  ;;  %v2600_v28 = vld [vmem:[%s2810_s25 + $0x4] sm:$0xf0]  ;;  %v2242_v29 = vld [vmem:[%s2810_s25 + $0x200] sm:$0xf]  ;;  %v2263_v31 = vor.u32 %v2667_v23, %v2260_v24  ;;  %v2603_v34 = vld [vmem:[%s2810_s25 + $0x24] sm:$0xf] }
  0x13   : > { %v2664_v30 = vld [vmem:[%s2810_s25 + $0x204] sm:$0xf0]  ;;  %v1987_v32 = vor.u32 %v2600_v28, %v1986_v27  ;;  %v2004_v35 = vld [vmem:[%s2810_s25 + $0x28] sm:$0xf0]  ;;  %v2669_v36 = vld [vmem:[%s2810_s25 + $0x234] sm:$0xf] }
  0x14   : > { %1133 = vmatpush.bf16.msra.mxu0 %v2732_v9  ;;  %2738 = vmatpush.bf16.msra.mxu2 %v2732_v9  ;;  %v2243_v33 = vor.u32 %v2664_v30, %v2242_v29  ;;  %v2268_v37 = vld [vmem:[%s2810_s25 + $0x238] sm:$0xf0]  ;;  %v2007_v38 = vor.u32 %v2603_v34, %v2004_v35  ;;  %v1994_v39 = vld [vmem:[%s2810_s25 + $0x10] sm:$0xf]  ;;  %v2602_v40 = vld [vmem:[%s2810_s25 + $0x14] sm:$0xf0] }
  0x15   : > { %v2250_v41 = vld [vmem:[%s2810_s25 + $0x210] sm:$0xf]  ;;  %v2666_v42 = vld [vmem:[%s2810_s25 + $0x214] sm:$0xf0]  ;;  %v2271_v43 = vor.u32 %v2669_v36, %v2268_v37  ;;  %v1995_v44 = vor.u32 %v2602_v40, %v1994_v39  ;;  %v2605_v46 = vld [vmem:[%s2810_s25 + $0x34] sm:$0xf] }
  0x16   : > { %1467 = vmatpush.bf16.msra.mxu1 %v2735_v10  ;;  %2745 = vmatpush.bf16.msra.mxu3 %v2735_v10  ;;  %v2251_v45 = vor.u32 %v2666_v42, %v2250_v41  ;;  %v2012_v47 = vld [vmem:[%s2810_s25 + $0x38] sm:$0xf0]  ;;  %v2671_v48 = vld [vmem:[%s2810_s25 + $0x244] sm:$0xf]  ;;  %v2276_v49 = vld [vmem:[%s2810_s25 + $0x248] sm:$0xf0] }
  0x17   : > { %v2015_v50 = vor.u32 %v2605_v46, %v2012_v47  ;;  %v2002_v51 = vld [vmem:[%s2810_s25 + $0x20] sm:$0xf]  ;;  %v2604_v52 = vld [vmem:[%s2810_s25 + $0x24] sm:$0xf0]  ;;  %v2279_v55 = vor.u32 %v2671_v48, %v2276_v49  ;;  %v2607_v58 = vld [vmem:[%s2810_s25 + $0x44] sm:$0xf] }
  0x18   : > { %1134 = vmatpush.bf16.msra.mxu0 %v2731_v14  ;;  %2739 = vmatpush.bf16.msra.mxu2 %v2731_v14  ;;  %v2258_v53 = vld [vmem:[%s2810_s25 + $0x220] sm:$0xf]  ;;  %v2668_v54 = vld [vmem:[%s2810_s25 + $0x224] sm:$0xf0]  ;;  %v2003_v56 = vor.u32 %v2604_v52, %v2002_v51  ;;  %v2020_v59 = vld [vmem:[%s2810_s25 + $0x48] sm:$0xf0] }
  0x19   : > { %2532 = vmatmul.msk.bf16.vlgmr.msra.gmra.mxu1 %vm931_vm2, %v1991_v13  ;;  %2565 = vmatmul.msk.bf16.vlgmr.msra.gmra.mxu3 %vm931_vm2, %v2255_v17  ;;  %v2259_v57 = vor.u32 %v2668_v54, %v2258_v53  ;;  %v2673_v60 = vld [vmem:[%s2810_s25 + $0x254] sm:$0xf]  ;;  %v2284_v61 = vld [vmem:[%s2810_s25 + $0x258] sm:$0xf0]  ;;  %v2023_v62 = vor.u32 %v2607_v58, %v2020_v59  ;;  %v2010_v63 = vld [vmem:[%s2810_s25 + $0x30] sm:$0xf] }
  0x1a   : > { %v2606_v0 = vld [vmem:[%s2810_s25 + $0x34] sm:$0xf0]  ;;  %v2266_v1 = vld [vmem:[%s2810_s25 + $0x230] sm:$0xf]  ;;  %v2287_v3 = vor.u32 %v2673_v60, %v2284_v61  ;;  %v2609_v6 = vld [vmem:[%s2810_s25 + $0x54] sm:$0xf] }
  0x1b   : > { %v2670_v2 = vld [vmem:[%s2810_s25 + $0x234] sm:$0xf0]  ;;  %v2011_v4 = vor.u32 %v2606_v0, %v2010_v63  ;;  %v2028_v7 = vld [vmem:[%s2810_s25 + $0x58] sm:$0xf0]  ;;  %v2675_v8 = vld [vmem:[%s2810_s25 + $0x264] sm:$0xf] }
  0x1c   : > { %1135 = vmatpush.bf16.msra.mxu0 %v2730_v18  ;;  %2740 = vmatpush.bf16.msra.mxu2 %v2730_v18  ;;  %v2267_v5 = vor.u32 %v2670_v2, %v2266_v1  ;;  %v2292_v9 = vld [vmem:[%s2810_s25 + $0x268] sm:$0xf0]  ;;  %v2031_v10 = vor.u32 %v2609_v6, %v2028_v7  ;;  %v2018_v11 = vld [vmem:[%s2810_s25 + $0x40] sm:$0xf]  ;;  %v2608_v12 = vld [vmem:[%s2810_s25 + $0x44] sm:$0xf0] }
  0x1d   : > { %v2274_v13 = vld [vmem:[%s2810_s25 + $0x240] sm:$0xf]  ;;  %v2672_v14 = vld [vmem:[%s2810_s25 + $0x244] sm:$0xf0]  ;;  %v2295_v15 = vor.u32 %v2675_v8, %v2292_v9  ;;  %v2019_v16 = vor.u32 %v2608_v12, %v2018_v11  ;;  %v2611_v18 = vld [vmem:[%s2810_s25 + $0x64] sm:$0xf] }
  0x1e   : > { %v2275_v17 = vor.u32 %v2672_v14, %v2274_v13  ;;  %v2300_v21 = vld [vmem:[%s2810_s25 + $0x278] sm:$0xf0]  ;;  %v2026_v23 = vld [vmem:[%s2810_s25 + $0x50] sm:$0xf]  ;;  %v2610_v24 = vld [vmem:[%s2810_s25 + $0x54] sm:$0xf0] }
  0x1f   : > { %v2027_v28 = vor.u32 %v2610_v24, %v2026_v23  ;;  %v2613_v30 = vld [vmem:[%s2810_s25 + $0x74] sm:$0xf]  ;;  %v2034_v35 = vld [vmem:[%s2810_s25 + $0x60] sm:$0xf]  ;;  %v2612_v36 = vld [vmem:[%s2810_s25 + $0x64] sm:$0xf0] }
  0x20   : > { %1136 = vmatpush.bf16.msra.mxu0 %v2729_v19  ;;  %2741 = vmatpush.bf16.msra.mxu2 %v2729_v19  ;;  %v2036_v19 = vld [vmem:[%s2810_s25 + $0x68] sm:$0xf0]  ;;  %v2290_v37 = vld [vmem:[%s2810_s25 + $0x260] sm:$0xf]  ;;  %v2035_v40 = vor.u32 %v2612_v36, %v2034_v35  ;;  %v2615_v42 = vld [vmem:[%s2810_s25 + $0x84] sm:$0xf] }
  0x21   : > { %v2039_v22 = vor.u32 %v2611_v18, %v2036_v19  ;;  %v2042_v47 = vld [vmem:[%s2810_s25 + $0x70] sm:$0xf]  ;;  %v2614_v48 = vld [vmem:[%s2810_s25 + $0x74] sm:$0xf0]  ;;  %v2060_v58 = vld [vmem:[%s2810_s25 + $0x98] sm:$0xf0] }
  0x22   : > { %v2678_v51 = vld [vmem:[%s2810_s25 + $0x274] sm:$0xf0]  ;;  %v2043_v53 = vor.u32 %v2614_v48, %v2042_v47  ;;  %v2683_v59 = vld [vmem:[%s2810_s25 + $0x2a4] sm:$0xf]  ;;  %v2324_v60 = vld [vmem:[%s2810_s25 + $0x2a8] sm:$0xf0] }
  0x23   : > { %v2616_v63 = vld [vmem:[%s2810_s25 + $0x84] sm:$0xf0]  ;;  %v2306_v2 = vld [vmem:[%s2810_s25 + $0x280] sm:$0xf]  ;;  %v2619_v14 = vld [vmem:[%s2810_s25 + $0xa4] sm:$0xf] }
  0x24   : > { %1137 = vmatpush.bf16.msra.mxu0 %v2728_v20  ;;  %2742 = vmatpush.bf16.msra.mxu2 %v2728_v20  ;;  %v2677_v20 = vld [vmem:[%s2810_s25 + $0x274] sm:$0xf]  ;;  %v2058_v19 = vld [vmem:[%s2810_s25 + $0x90] sm:$0xf]  ;;  %v2682_v24 = vld [vmem:[%s2810_s25 + $0x294] sm:$0xf0] }
  0x25   : > { %v2303_v27 = vor.u32 %v2677_v20, %v2300_v21  ;;  %v2618_v20 = vld [vmem:[%s2810_s25 + $0x94] sm:$0xf0]  ;;  %v2314_v23 = vld [vmem:[%s2810_s25 + $0x290] sm:$0xf]  ;;  %v2684_v47 = vld [vmem:[%s2810_s25 + $0x2a4] sm:$0xf0] }
  0x28   : > { %1138 = vmatpush.bf16.msra.mxu0 %v2727_v26  ;;  %2743 = vmatpush.bf16.msra.mxu2 %v2727_v26  ;;  %v2674_v26 = vld [vmem:[%s2810_s25 + $0x254] sm:$0xf0] }
  0x29   : > { %2533 = vmatmul.msk.bf16.gmra.mxu1 %vm931_vm2, %v1999_v25  ;;  %2566 = vmatmul.msk.bf16.gmra.mxu3 %vm931_vm2, %v2263_v31  ;;  %v2282_v25 = vld [vmem:[%s2810_s25 + $0x250] sm:$0xf]  ;;  %v2044_v31 = vld [vmem:[%s2810_s25 + $0x78] sm:$0xf0] }
  0x2a   : > { %v2283_v29 = vor.u32 %v2674_v26, %v2282_v25  ;;  %v2047_v34 = vor.u32 %v2613_v30, %v2044_v31 }
  0x2b   : > { %1139 = vmatmul.bf16.vlgmr.msra.gmra.mxu0 %v1987_v32  ;;  %1299 = vmatmul.bf16.vlgmr.msra.gmra.mxu2 %v2243_v33  ;;  %v2679_v32 = vld [vmem:[%s2810_s25 + $0x284] sm:$0xf]  ;;  %v2308_v33 = vld [vmem:[%s2810_s25 + $0x288] sm:$0xf0] }
  0x2c   : > { %v2311_v39 = vor.u32 %v2679_v32, %v2308_v33 }
  0x39   : > { %2534 = vmatmul.msk.bf16.gmra.mxu1 %vm931_vm2, %v2007_v38  ;;  %2567 = vmatmul.msk.bf16.gmra.mxu3 %vm931_vm2, %v2271_v43  ;;  %v2676_v38 = vld [vmem:[%s2810_s25 + $0x264] sm:$0xf0]  ;;  %v2052_v43 = vld [vmem:[%s2810_s25 + $0x88] sm:$0xf0] }
  0x3a   : > { %v2291_v41 = vor.u32 %v2676_v38, %v2290_v37  ;;  %v2055_v46 = vor.u32 %v2615_v42, %v2052_v43  ;;  %v2621_v37 = vld [vmem:[%s2810_s25 + $0xb4] sm:$0xf]  ;;  %v2076_v38 = vld [vmem:[%s2810_s25 + $0xb8] sm:$0xf0]  ;;  %v2066_v42 = vld [vmem:[%s2810_s25 + $0xa0] sm:$0xf] }
  0x3b   : > { %1144 = vmatmul.bf16.gmra.mxu0 %v1995_v44  ;;  %1304 = vmatmul.bf16.gmra.mxu2 %v2251_v45  ;;  %v2681_v44 = vld [vmem:[%s2810_s25 + $0x294] sm:$0xf]  ;;  %v2316_v45 = vld [vmem:[%s2810_s25 + $0x298] sm:$0xf0]  ;;  %v2620_v43 = vld [vmem:[%s2810_s25 + $0xa4] sm:$0xf0] }
  0x3c   : > { %v2319_v52 = vor.u32 %v2681_v44, %v2316_v45 }
  0x49   : > { %2535 = vmatmul.msk.bf16.gmra.mxu1 %vm931_vm2, %v2015_v50  ;;  %2568 = vmatmul.msk.bf16.gmra.mxu3 %vm931_vm2, %v2279_v55  ;;  %v2298_v50 = vld [vmem:[%s2810_s25 + $0x270] sm:$0xf] }
  0x4a   : > { %v2299_v54 = vor.u32 %v2678_v51, %v2298_v50  ;;  %v2067_v50 = vor.u32 %v2620_v43, %v2066_v42 }
  0x4b   : > { %1149 = vmatmul.bf16.gmra.mxu0 %v2003_v56  ;;  %1309 = vmatmul.bf16.gmra.mxu2 %v2259_v57  ;;  %v2617_v57 = vld [vmem:[%s2810_s25 + $0x94] sm:$0xf] }
  0x4c   : > { %v2063_v61 = vor.u32 %v2617_v57, %v2060_v58 }
  0x59   : > { %2536 = vmatmul.msk.bf16.gmra.mxu1 %vm931_vm2, %v2023_v62  ;;  %2569 = vmatmul.msk.bf16.gmra.mxu3 %vm931_vm2, %v2287_v3  ;;  %v2050_v62 = vld [vmem:[%s2810_s25 + $0x80] sm:$0xf]  ;;  %v2680_v3 = vld [vmem:[%s2810_s25 + $0x284] sm:$0xf0] }
  0x5a   : > { %v2307_v7 = vor.u32 %v2680_v3, %v2306_v2  ;;  %v2074_v2 = vld [vmem:[%s2810_s25 + $0xb0] sm:$0xf]  ;;  %v2622_v3 = vld [vmem:[%s2810_s25 + $0xb4] sm:$0xf0] }
  0x5b   : > { %1154 = vmatmul.bf16.gmra.mxu0 %v2011_v4  ;;  %1314 = vmatmul.bf16.gmra.mxu2 %v2267_v5  ;;  %v2327_v4 = vor.u32 %v2683_v59, %v2324_v60  ;;  %v2051_v5 = vor.u32 %v2616_v63, %v2050_v62  ;;  %v2084_v62 = vld [vmem:[%s2810_s25 + $0xc8] sm:$0xf0]  ;;  %v2689_v63 = vld [vmem:[%s2810_s25 + $0x2d4] sm:$0xf] }
  0x69   : > { %2537 = vmatmul.msk.bf16.gmra.mxu1 %vm931_vm2, %v2031_v10  ;;  %2570 = vmatmul.msk.bf16.gmra.mxu3 %vm931_vm2, %v2295_v15  ;;  %v2068_v15 = vld [vmem:[%s2810_s25 + $0xa8] sm:$0xf0] }
  0x6a   : > { %v2071_v18 = vor.u32 %v2619_v14, %v2068_v15 }
  0x6b   : > { %1159 = vmatmul.bf16.gmra.mxu0 %v2019_v16  ;;  %1319 = vmatmul.bf16.gmra.mxu2 %v2275_v17  ;;  %v2685_v16 = vld [vmem:[%s2810_s25 + $0x2b4] sm:$0xf]  ;;  %v2332_v17 = vld [vmem:[%s2810_s25 + $0x2b8] sm:$0xf0] }
  0x6c   : > { %v2335_v25 = vor.u32 %v2685_v16, %v2332_v17 }
  0x79   : > { %2538 = vmatmul.msk.bf16.gmra.mxu1 %vm931_vm2, %v2039_v22  ;;  %2571 = vmatmul.msk.bf16.gmra.mxu3 %vm931_vm2, %v2303_v27  ;;  %v2059_v27 = vor.u32 %v2618_v20, %v2058_v19 }
  0x7b   : > { %1164 = vmatmul.bf16.gmra.mxu0 %v2027_v28  ;;  %1324 = vmatmul.bf16.gmra.mxu2 %v2283_v29  ;;  %v2315_v29 = vor.u32 %v2682_v24, %v2314_v23  ;;  %v2092_v23 = vld [vmem:[%s2810_s25 + $0xd8] sm:$0xf0]  ;;  %v2691_v24 = vld [vmem:[%s2810_s25 + $0x2e4] sm:$0xf] }
  0x89   : > { %2539 = vmatmul.msk.bf16.gmra.mxu1 %vm931_vm2, %v2047_v34  ;;  %2572 = vmatmul.msk.bf16.gmra.mxu3 %vm931_vm2, %v2311_v39  ;;  %v2687_v39 = vld [vmem:[%s2810_s25 + $0x2c4] sm:$0xf] }
  0x8b   : > { %1169 = vmatmul.bf16.gmra.mxu0 %v2035_v40  ;;  %1329 = vmatmul.bf16.gmra.mxu2 %v2291_v41  ;;  %v2340_v40 = vld [vmem:[%s2810_s25 + $0x2c8] sm:$0xf0]  ;;  %v2079_v41 = vor.u32 %v2621_v37, %v2076_v38 }
  0x8c   : > { %v2343_v48 = vor.u32 %v2687_v39, %v2340_v40 }
  0x96   : > { %v1469_v49 = vpop.f32.mrf.mxu1 }
  0x99   : > { %2540 = vmatmul.msk.bf16.gmra.mxu1 %vm931_vm2, %v2055_v46  ;;  %2573 = vmatmul.msk.bf16.gmra.mxu3 %vm931_vm2, %v2319_v52  ;;  %v2322_v46 = vld [vmem:[%s2810_s25 + $0x2a0] sm:$0xf] }
  0x9b   : > { %1174 = vmatmul.bf16.gmra.mxu0 %v2043_v53  ;;  %1334 = vmatmul.bf16.gmra.mxu2 %v2299_v54  ;;  %v2323_v53 = vor.u32 %v2684_v47, %v2322_v46  ;;  %v2627_v47 = vld [vmem:[%s2810_s25 + $0xe4] sm:$0xf] }
  0x9c   : > { %v1634_v55 = vpop.f32.mrf.mxu3 }
  0x9e   : > { %v1471_v56 = vpop.f32.mrf.mxu1 }
  0xa4   : > { %v2919_v0 = vpop.f32.mrf.mxu3 }
  0xa6   : > { %v1474_v1 = vpop.f32.mrf.mxu1 }
  0xa8   : > { %v1140_v6 = vpop.f32.mrf.mxu0 }
  0xa9   : > { %2541 = vmatmul.msk.bf16.gmra.mxu1 %vm931_vm2, %v2063_v61  ;;  %v1470_v8 = vadd.f32 %v1469_v49, %v1140_v6  ;;  %2574 = vmatmul.msk.bf16.gmra.mxu3 %vm931_vm2, %v2327_v4  ;;  %v2623_v61 = vld [vmem:[%s2810_s25 + $0xc4] sm:$0xf]  ;;  %v2330_v6 = vld [vmem:[%s2810_s25 + $0x2b0] sm:$0xf] }
  0xab   : > { %1790 = vst.msk [vmem:[%s2929_s11] sm:$0xff] %vm1789_vm3, %v1470_v8  ;;  %1179 = vmatmul.bf16.gmra.mxu0 %v2051_v5  ;;  %1339 = vmatmul.bf16.gmra.mxu2 %v2307_v7  ;;  %v2686_v7 = vld [vmem:[%s2810_s25 + $0x2b4] sm:$0xf0] }
  0xac   : > { %v2934_v9 = vpop.f32.mrf.mxu3  ;;  %v2331_v14 = vor.u32 %v2686_v7, %v2330_v6  ;;  %v2629_v7 = vld [vmem:[%s2810_s25 + $0xf4] sm:$0xf] }
  0xae   : > { %v1476_v10 = vpop.f32.mrf.mxu1  ;;  %v2936_v11 = vpop.f32.mrf.mxu2 }
  0xb0   : > { %v1142_v12 = vpop.f32.mrf.mxu0 }
  0xb1   : > { %v1472_v13 = vadd.f32 %v1471_v56, %v1142_v12 }
  0xb3   : > { %1791 = vst.msk [vmem:[%s2929_s11 + $0x8] sm:$0xff] %vm1789_vm3, %v1472_v13 }
  0xb4   : > { %v2946_v21 = vpop.f32.mrf.mxu3 }
  0xb6   : > { %v1479_v22 = vpop.f32.mrf.mxu1  ;;  %v2950_v26 = vpop.f32.mrf.mxu2 }
  0xb8   : > { %v1145_v28 = vpop.f32.mrf.mxu0 }
  0xb9   : > { %2542 = vmatmul.msk.bf16.gmra.mxu1 %vm931_vm2, %v2071_v18  ;;  %v1475_v30 = vadd.f32 %v1474_v1, %v1145_v28  ;;  %2575 = vmatmul.msk.bf16.gmra.mxu3 %vm931_vm2, %v2335_v25  ;;  %v2087_v1 = vor.u32 %v2623_v61, %v2084_v62  ;;  %v2356_v25 = vld [vmem:[%s2810_s25 + $0x2e8] sm:$0xf0]  ;;  %v2082_v28 = vld [vmem:[%s2810_s25 + $0xc0] sm:$0xf] }
  0xbb   : > { %1792 = vst.msk [vmem:[%s2929_s11 + $0x10] sm:$0xff] %vm1789_vm3, %v1475_v30  ;;  %1184 = vmatmul.bf16.gmra.mxu0 %v2059_v27  ;;  %1344 = vmatmul.bf16.gmra.mxu2 %v2315_v29  ;;  %v2624_v29 = vld [vmem:[%s2810_s25 + $0xc4] sm:$0xf0] }
  0xbc   : > { %v2956_v31 = vpop.f32.mrf.mxu3 }
  0xbe   : > { %v1481_v32 = vpop.f32.mrf.mxu1  ;;  %v1305_v33 = vpop.f32.mrf.mxu2 }
  0xbf   : > { %v1635_v34 = vadd.f32 %v1634_v55, %v1305_v33  ;;  %v2338_v33 = vld [vmem:[%s2810_s25 + $0x2c0] sm:$0xf] }
  0xc0   : > { %v1147_v35 = vpop.f32.mrf.mxu0 }
  0xc1   : > { %v1477_v36 = vadd.f32 %v1476_v10, %v1147_v35  ;;  %1856 = vst.msk [vmem:[%s2929_s11 + $0x210] sm:$0xff] %vm1789_vm3, %v1635_v34  ;;  %v2075_v10 = vor.u32 %v2622_v3, %v2074_v2  ;;  %v2359_v34 = vor.u32 %v2691_v24, %v2356_v25 }
  0xc3   : > { %1793 = vst.msk [vmem:[%s2929_s11 + $0x18] sm:$0xff] %vm1789_vm3, %v1477_v36  ;;  %v2083_v36 = vor.u32 %v2624_v29, %v2082_v28 }
  0xc4   : > { %v2968_v44 = vpop.f32.mrf.mxu3 }
  0xc6   : > { %v1484_v45 = vpop.f32.mrf.mxu1  ;;  %v1307_v49 = vpop.f32.mrf.mxu2 }
  0xc7   : > { %v1637_v51 = vadd.f32 %v2919_v0, %v1307_v49  ;;  %v2348_v0 = vld [vmem:[%s2810_s25 + $0x2d8] sm:$0xf0]  ;;  %v2693_v49 = vld [vmem:[%s2810_s25 + $0x2f4] sm:$0xf] }
  0xc8   : > { %v1150_v52 = vpop.f32.mrf.mxu0  ;;  %v2351_v8 = vor.u32 %v2689_v63, %v2348_v0 }
  0xc9   : > { %2543 = vmatmul.msk.bf16.gmra.mxu1 %vm931_vm2, %v2079_v41  ;;  %v1480_v54 = vadd.f32 %v1479_v22, %v1150_v52  ;;  %2576 = vmatmul.msk.bf16.gmra.mxu3 %vm931_vm2, %v2343_v48  ;;  %1857 = vst.msk [vmem:[%s2929_s11 + $0x218] sm:$0xff] %vm1789_vm3, %v1637_v51  ;;  %v2625_v22 = vld [vmem:[%s2810_s25 + $0xd4] sm:$0xf]  ;;  %v2100_v48 = vld [vmem:[%s2810_s25 + $0xe8] sm:$0xf0] }
  0xca   : > { %v2095_v27 = vor.u32 %v2625_v22, %v2092_v23  ;;  %v2103_v51 = vor.u32 %v2627_v47, %v2100_v48  ;;  %v2090_v52 = vld [vmem:[%s2810_s25 + $0xd0] sm:$0xf] }
  0xcb   : > { %1794 = vst.msk [vmem:[%s2929_s11 + $0x20] sm:$0xff] %vm1789_vm3, %v1480_v54  ;;  %1189 = vmatmul.bf16.gmra.mxu0 %v2067_v50  ;;  %1349 = vmatmul.bf16.gmra.mxu2 %v2323_v53  ;;  %v2364_v50 = vld [vmem:[%s2810_s25 + $0x2f8] sm:$0xf0]  ;;  %v2626_v53 = vld [vmem:[%s2810_s25 + $0xd4] sm:$0xf0] }
  0xcc   : > { %v2979_v55 = vpop.f32.mrf.mxu3 }
  0xce   : > { %v1486_v56 = vpop.f32.mrf.mxu1  ;;  %v1310_v57 = vpop.f32.mrf.mxu2 }
  0xcf   : > { %v1640_v58 = vadd.f32 %v2934_v9, %v1310_v57  ;;  %v2346_v57 = vld [vmem:[%s2810_s25 + $0x2d0] sm:$0xf] }
  0xd0   : > { %v1152_v59 = vpop.f32.mrf.mxu0 }
  0xd1   : > { %v1482_v60 = vadd.f32 %v1481_v32, %v1152_v59  ;;  %1858 = vst.msk [vmem:[%s2929_s11 + $0x220] sm:$0xff] %vm1789_vm3, %v1640_v58  ;;  %v2367_v58 = vor.u32 %v2693_v49, %v2364_v50 }
  0xd3   : > { %1795 = vst.msk [vmem:[%s2929_s11 + $0x28] sm:$0xff] %vm1789_vm3, %v1482_v60  ;;  %v2091_v60 = vor.u32 %v2626_v53, %v2090_v52 }
  0xd4   : > { %v2992_v4 = vpop.f32.mrf.mxu3 }
  0xd6   : > { %v1489_v5 = vpop.f32.mrf.mxu1  ;;  %v1312_v9 = vpop.f32.mrf.mxu2 }
  0xd7   : > { %v1642_v12 = vadd.f32 %v2946_v21, %v1312_v9  ;;  %v2695_v9 = vld [vmem:[%s2810_s25 + $0x304] sm:$0xf] }
  0xd8   : > { %v1155_v13 = vpop.f32.mrf.mxu0 }
  0xd9   : > { %2544 = vmatmul.msk.bf16.gmra.mxu1 %vm931_vm2, %v2087_v1  ;;  %v1485_v15 = vadd.f32 %v1484_v45, %v1155_v13  ;;  %2577 = vmatmul.msk.bf16.gmra.mxu3 %vm931_vm2, %v2351_v8  ;;  %1859 = vst.msk [vmem:[%s2929_s11 + $0x228] sm:$0xff] %vm1789_vm3, %v1642_v12  ;;  %v2108_v8 = vld [vmem:[%s2810_s25 + $0xf8] sm:$0xf0]  ;;  %v2098_v13 = vld [vmem:[%s2810_s25 + $0xe0] sm:$0xf] }
  0xda   : > { %v2111_v12 = vor.u32 %v2629_v7, %v2108_v8 }
  0xdb   : > { %1796 = vst.msk [vmem:[%s2929_s11 + $0x30] sm:$0xff] %vm1789_vm3, %v1485_v15  ;;  %1194 = vmatmul.bf16.gmra.mxu0 %v2075_v10  ;;  %1354 = vmatmul.bf16.gmra.mxu2 %v2331_v14  ;;  %v2372_v10 = vld [vmem:[%s2810_s25 + $0x308] sm:$0xf0]  ;;  %v2628_v14 = vld [vmem:[%s2810_s25 + $0xe4] sm:$0xf0] }
  0xdc   : > { %v3003_v16 = vpop.f32.mrf.mxu3 }
  0xde   : > { %v1491_v17 = vpop.f32.mrf.mxu1  ;;  %v1315_v18 = vpop.f32.mrf.mxu2 }
  0xdf   : > { %v1645_v19 = vadd.f32 %v2956_v31, %v1315_v18  ;;  %v2688_v31 = vld [vmem:[%s2810_s25 + $0x2c4] sm:$0xf0]  ;;  %v2354_v18 = vld [vmem:[%s2810_s25 + $0x2e0] sm:$0xf] }
  0xe0   : > { %v1157_v20 = vpop.f32.mrf.mxu0  ;;  %v2339_v39 = vor.u32 %v2688_v31, %v2338_v33  ;;  %v2631_v31 = vld [vmem:[%s2810_s25 + $0x104] sm:$0xf] }
  0xe1   : > { %v1487_v21 = vadd.f32 %v1486_v56, %v1157_v20  ;;  %1860 = vst.msk [vmem:[%s2929_s11 + $0x230] sm:$0xff] %vm1789_vm3, %v1645_v19  ;;  %v2375_v19 = vor.u32 %v2695_v9, %v2372_v10 }
  0xe3   : > { %1797 = vst.msk [vmem:[%s2929_s11 + $0x38] sm:$0xff] %vm1789_vm3, %v1487_v21  ;;  %v2099_v21 = vor.u32 %v2628_v14, %v2098_v13 }
  0xe4   : > { %v3016_v30 = vpop.f32.mrf.mxu3 }
  0xe6   : > { %v1494_v32 = vpop.f32.mrf.mxu1  ;;  %v1317_v35 = vpop.f32.mrf.mxu2 }
  0xe7   : > { %v1647_v37 = vadd.f32 %v2968_v44, %v1317_v35  ;;  %v2697_v35 = vld [vmem:[%s2810_s25 + $0x314] sm:$0xf] }
  0xe8   : > { %v1160_v38 = vpop.f32.mrf.mxu0 }
  0xe9   : > { %2545 = vmatmul.msk.bf16.gmra.mxu1 %vm931_vm2, %v2095_v27  ;;  %v1490_v40 = vadd.f32 %v1489_v5, %v1160_v38  ;;  %2578 = vmatmul.msk.bf16.gmra.mxu3 %vm931_vm2, %v2359_v34  ;;  %1861 = vst.msk [vmem:[%s2929_s11 + $0x238] sm:$0xff] %vm1789_vm3, %v1647_v37  ;;  %v2116_v34 = vld [vmem:[%s2810_s25 + $0x108] sm:$0xf0]  ;;  %v2106_v38 = vld [vmem:[%s2810_s25 + $0xf0] sm:$0xf] }
  0xea   : > { %v2119_v37 = vor.u32 %v2631_v31, %v2116_v34 }
  0xeb   : > { %1798 = vst.msk [vmem:[%s2929_s11 + $0x40] sm:$0xff] %vm1789_vm3, %v1490_v40  ;;  %1199 = vmatmul.bf16.gmra.mxu0 %v2083_v36  ;;  %1359 = vmatmul.bf16.gmra.mxu2 %v2339_v39  ;;  %v2380_v36 = vld [vmem:[%s2810_s25 + $0x318] sm:$0xf0]  ;;  %v2630_v39 = vld [vmem:[%s2810_s25 + $0xf4] sm:$0xf0] }
  0xec   : > { %v3027_v41 = vpop.f32.mrf.mxu3 }
  0xee   : > { %v1496_v42 = vpop.f32.mrf.mxu1  ;;  %v1320_v43 = vpop.f32.mrf.mxu2 }
  0xef   : > { %v1650_v44 = vadd.f32 %v2979_v55, %v1320_v43  ;;  %v2690_v55 = vld [vmem:[%s2810_s25 + $0x2d4] sm:$0xf0]  ;;  %v2362_v43 = vld [vmem:[%s2810_s25 + $0x2f0] sm:$0xf] }
  0xf0   : > { %v1162_v45 = vpop.f32.mrf.mxu0  ;;  %v2347_v63 = vor.u32 %v2690_v55, %v2346_v57  ;;  %v2633_v55 = vld [vmem:[%s2810_s25 + $0x114] sm:$0xf] }
  0xf1   : > { %v1492_v46 = vadd.f32 %v1491_v17, %v1162_v45  ;;  %1862 = vst.msk [vmem:[%s2929_s11 + $0x240] sm:$0xff] %vm1789_vm3, %v1650_v44  ;;  %v2383_v44 = vor.u32 %v2697_v35, %v2380_v36 }
  0xf3   : > { %1799 = vst.msk [vmem:[%s2929_s11 + $0x48] sm:$0xff] %vm1789_vm3, %v1492_v46  ;;  %v2107_v46 = vor.u32 %v2630_v39, %v2106_v38 }
  0xf4   : > { %v3040_v54 = vpop.f32.mrf.mxu3 }
  0xf6   : > { %v1499_v56 = vpop.f32.mrf.mxu1  ;;  %v1322_v59 = vpop.f32.mrf.mxu2 }
  0xf7   : > { %v1652_v61 = vadd.f32 %v2992_v4, %v1322_v59  ;;  %v2699_v59 = vld [vmem:[%s2810_s25 + $0x324] sm:$0xf] }
  0xf8   : > { %v1165_v62 = vpop.f32.mrf.mxu0 }
  0xf9   : > { %2546 = vmatmul.msk.bf16.gmra.mxu1 %vm931_vm2, %v2103_v51  ;;  %v1495_v0 = vadd.f32 %v1494_v32, %v1165_v62  ;;  %2579 = vmatmul.msk.bf16.gmra.mxu3 %vm931_vm2, %v2367_v58  ;;  %1863 = vst.msk [vmem:[%s2929_s11 + $0x248] sm:$0xff] %vm1789_vm3, %v1652_v61  ;;  %v2124_v58 = vld [vmem:[%s2810_s25 + $0x118] sm:$0xf0]  ;;  %v2114_v62 = vld [vmem:[%s2810_s25 + $0x100] sm:$0xf] }
  0xfa   : > { %v2127_v61 = vor.u32 %v2633_v55, %v2124_v58 }
  0xfb   : > { %1800 = vst.msk [vmem:[%s2929_s11 + $0x50] sm:$0xff] %vm1789_vm3, %v1495_v0  ;;  %1204 = vmatmul.bf16.gmra.mxu0 %v2091_v60  ;;  %1364 = vmatmul.bf16.gmra.mxu2 %v2347_v63  ;;  %v2388_v60 = vld [vmem:[%s2810_s25 + $0x328] sm:$0xf0]  ;;  %v2632_v63 = vld [vmem:[%s2810_s25 + $0x104] sm:$0xf0] }
  0xfc   : > { %v3051_v1 = vpop.f32.mrf.mxu3 }
  0xfe   : > { %v1501_v2 = vpop.f32.mrf.mxu1  ;;  %v1325_v3 = vpop.f32.mrf.mxu2 }
  0xff   : > { %v1655_v4 = vadd.f32 %v3003_v16, %v1325_v3  ;;  %v2692_v16 = vld [vmem:[%s2810_s25 + $0x2e4] sm:$0xf0]  ;;  %v2370_v3 = vld [vmem:[%s2810_s25 + $0x300] sm:$0xf] }
 0x100   : > { %v1167_v5 = vpop.f32.mrf.mxu0  ;;  %v2355_v24 = vor.u32 %v2692_v16, %v2354_v18  ;;  %v2635_v16 = vld [vmem:[%s2810_s25 + $0x124] sm:$0xf] }
 0x101   : > { %v1497_v6 = vadd.f32 %v1496_v42, %v1167_v5  ;;  %1864 = vst.msk [vmem:[%s2929_s11 + $0x250] sm:$0xff] %vm1789_vm3, %v1655_v4  ;;  %v2391_v4 = vor.u32 %v2699_v59, %v2388_v60 }
 0x103   : > { %1801 = vst.msk [vmem:[%s2929_s11 + $0x58] sm:$0xff] %vm1789_vm3, %v1497_v6  ;;  %v2115_v6 = vor.u32 %v2632_v63, %v2114_v62 }
 0x104   : > { %v3064_v15 = vpop.f32.mrf.mxu3 }
 0x106   : > { %v1504_v17 = vpop.f32.mrf.mxu1  ;;  %v1327_v20 = vpop.f32.mrf.mxu2 }
 0x107   : > { %v1657_v22 = vadd.f32 %v3016_v30, %v1327_v20  ;;  %v2701_v20 = vld [vmem:[%s2810_s25 + $0x334] sm:$0xf] }
 0x108   : > { %v1170_v23 = vpop.f32.mrf.mxu0 }
 0x109   : > { %2547 = vmatmul.msk.bf16.gmra.mxu1 %vm931_vm2, %v2111_v12  ;;  %v1500_v25 = vadd.f32 %v1499_v56, %v1170_v23  ;;  %2580 = vmatmul.msk.bf16.gmra.mxu3 %vm931_vm2, %v2375_v19  ;;  %1865 = vst.msk [vmem:[%s2929_s11 + $0x258] sm:$0xff] %vm1789_vm3, %v1657_v22  ;;  %v2132_v19 = vld [vmem:[%s2810_s25 + $0x128] sm:$0xf0]  ;;  %v2122_v23 = vld [vmem:[%s2810_s25 + $0x110] sm:$0xf] }
 0x10a   : > { %v2135_v22 = vor.u32 %v2635_v16, %v2132_v19 }
 0x10b   : > { %1802 = vst.msk [vmem:[%s2929_s11 + $0x60] sm:$0xff] %vm1789_vm3, %v1500_v25  ;;  %1209 = vmatmul.bf16.gmra.mxu0 %v2099_v21  ;;  %1369 = vmatmul.bf16.gmra.mxu2 %v2355_v24  ;;  %v2396_v21 = vld [vmem:[%s2810_s25 + $0x338] sm:$0xf0]  ;;  %v2634_v24 = vld [vmem:[%s2810_s25 + $0x114] sm:$0xf0] }
 0x10c   : > { %v3075_v27 = vpop.f32.mrf.mxu3 }
 0x10e   : > { %v1506_v28 = vpop.f32.mrf.mxu1  ;;  %v1330_v29 = vpop.f32.mrf.mxu2 }
 0x10f   : > { %v1660_v30 = vadd.f32 %v3027_v41, %v1330_v29  ;;  %v2694_v41 = vld [vmem:[%s2810_s25 + $0x2f4] sm:$0xf0]  ;;  %v2378_v29 = vld [vmem:[%s2810_s25 + $0x310] sm:$0xf] }
 0x110   : > { %v1172_v32 = vpop.f32.mrf.mxu0  ;;  %v2363_v49 = vor.u32 %v2694_v41, %v2362_v43  ;;  %v2637_v41 = vld [vmem:[%s2810_s25 + $0x134] sm:$0xf] }
 0x111   : > { %v1502_v33 = vadd.f32 %v1501_v2, %v1172_v32  ;;  %1866 = vst.msk [vmem:[%s2929_s11 + $0x260] sm:$0xff] %vm1789_vm3, %v1660_v30  ;;  %v2399_v30 = vor.u32 %v2701_v20, %v2396_v21 }
 0x113   : > { %1803 = vst.msk [vmem:[%s2929_s11 + $0x68] sm:$0xff] %vm1789_vm3, %v1502_v33  ;;  %v2123_v33 = vor.u32 %v2634_v24, %v2122_v23 }
 0x114   : > { %v3088_v40 = vpop.f32.mrf.mxu3 }
 0x116   : > { %v1509_v42 = vpop.f32.mrf.mxu1  ;;  %v1332_v45 = vpop.f32.mrf.mxu2 }
 0x117   : > { %v1662_v47 = vadd.f32 %v3040_v54, %v1332_v45  ;;  %v2703_v45 = vld [vmem:[%s2810_s25 + $0x344] sm:$0xf] }
 0x118   : > { %v1175_v48 = vpop.f32.mrf.mxu0 }
 0x119   : > { %2548 = vmatmul.msk.bf16.gmra.mxu1 %vm931_vm2, %v2119_v37  ;;  %v1505_v50 = vadd.f32 %v1504_v17, %v1175_v48  ;;  %2581 = vmatmul.msk.bf16.gmra.mxu3 %vm931_vm2, %v2383_v44  ;;  %1867 = vst.msk [vmem:[%s2929_s11 + $0x268] sm:$0xff] %vm1789_vm3, %v1662_v47  ;;  %v2140_v44 = vld [vmem:[%s2810_s25 + $0x138] sm:$0xf0]  ;;  %v2130_v48 = vld [vmem:[%s2810_s25 + $0x120] sm:$0xf] }
 0x11a   : > { %v2143_v47 = vor.u32 %v2637_v41, %v2140_v44 }
 0x11b   : > { %1804 = vst.msk [vmem:[%s2929_s11 + $0x70] sm:$0xff] %vm1789_vm3, %v1505_v50  ;;  %1214 = vmatmul.bf16.gmra.mxu0 %v2107_v46  ;;  %1374 = vmatmul.bf16.gmra.mxu2 %v2363_v49  ;;  %v2404_v46 = vld [vmem:[%s2810_s25 + $0x348] sm:$0xf0]  ;;  %v2636_v49 = vld [vmem:[%s2810_s25 + $0x124] sm:$0xf0] }
 0x11c   : > { %v3099_v51 = vpop.f32.mrf.mxu3 }
 0x11e   : > { %v1511_v52 = vpop.f32.mrf.mxu1  ;;  %v1335_v53 = vpop.f32.mrf.mxu2 }
 0x11f   : > { %v1665_v54 = vadd.f32 %v3051_v1, %v1335_v53  ;;  %v2696_v1 = vld [vmem:[%s2810_s25 + $0x304] sm:$0xf0]  ;;  %v2386_v53 = vld [vmem:[%s2810_s25 + $0x320] sm:$0xf] }
 0x120   : > { %v1177_v56 = vpop.f32.mrf.mxu0  ;;  %v2371_v9 = vor.u32 %v2696_v1, %v2370_v3  ;;  %v2639_v1 = vld [vmem:[%s2810_s25 + $0x144] sm:$0xf] }
 0x121   : > { %v1507_v57 = vadd.f32 %v1506_v28, %v1177_v56  ;;  %1868 = vst.msk [vmem:[%s2929_s11 + $0x270] sm:$0xff] %vm1789_vm3, %v1665_v54  ;;  %v2407_v54 = vor.u32 %v2703_v45, %v2404_v46 }
 0x123   : > { %1805 = vst.msk [vmem:[%s2929_s11 + $0x78] sm:$0xff] %vm1789_vm3, %v1507_v57  ;;  %v2131_v57 = vor.u32 %v2636_v49, %v2130_v48 }
 0x124   : > { %v3112_v0 = vpop.f32.mrf.mxu3 }
 0x126   : > { %v1514_v2 = vpop.f32.mrf.mxu1  ;;  %v1337_v5 = vpop.f32.mrf.mxu2 }
 0x127   : > { %v1667_v7 = vadd.f32 %v3064_v15, %v1337_v5  ;;  %v2705_v5 = vld [vmem:[%s2810_s25 + $0x354] sm:$0xf] }
 0x128   : > { %v1180_v8 = vpop.f32.mrf.mxu0 }
 0x129   : > { %2549 = vmatmul.msk.bf16.gmra.mxu1 %vm931_vm2, %v2127_v61  ;;  %v1510_v10 = vadd.f32 %v1509_v42, %v1180_v8  ;;  %2582 = vmatmul.msk.bf16.gmra.mxu3 %vm931_vm2, %v2391_v4  ;;  %1869 = vst.msk [vmem:[%s2929_s11 + $0x278] sm:$0xff] %vm1789_vm3, %v1667_v7  ;;  %v2148_v4 = vld [vmem:[%s2810_s25 + $0x148] sm:$0xf0]  ;;  %v2138_v8 = vld [vmem:[%s2810_s25 + $0x130] sm:$0xf] }
 0x12a   : > { %v2151_v7 = vor.u32 %v2639_v1, %v2148_v4 }
 0x12b   : > { %1806 = vst.msk [vmem:[%s2929_s11 + $0x80] sm:$0xff] %vm1789_vm3, %v1510_v10  ;;  %1219 = vmatmul.bf16.gmra.mxu0 %v2115_v6  ;;  %1379 = vmatmul.bf16.gmra.mxu2 %v2371_v9  ;;  %v2412_v6 = vld [vmem:[%s2810_s25 + $0x358] sm:$0xf0]  ;;  %v2638_v9 = vld [vmem:[%s2810_s25 + $0x134] sm:$0xf0] }
 0x12c   : > { %v3123_v12 = vpop.f32.mrf.mxu3 }
 0x12e   : > { %v1516_v13 = vpop.f32.mrf.mxu1  ;;  %v1340_v14 = vpop.f32.mrf.mxu2 }
 0x12f   : > { %v1670_v15 = vadd.f32 %v3075_v27, %v1340_v14  ;;  %v2698_v27 = vld [vmem:[%s2810_s25 + $0x314] sm:$0xf0]  ;;  %v2394_v14 = vld [vmem:[%s2810_s25 + $0x330] sm:$0xf] }
 0x130   : > { %v1182_v17 = vpop.f32.mrf.mxu0  ;;  %v2379_v35 = vor.u32 %v2698_v27, %v2378_v29  ;;  %v2641_v27 = vld [vmem:[%s2810_s25 + $0x154] sm:$0xf] }
 0x131   : > { %v1512_v18 = vadd.f32 %v1511_v52, %v1182_v17  ;;  %1870 = vst.msk [vmem:[%s2929_s11 + $0x280] sm:$0xff] %vm1789_vm3, %v1670_v15  ;;  %v2415_v15 = vor.u32 %v2705_v5, %v2412_v6 }
 0x133   : > { %1807 = vst.msk [vmem:[%s2929_s11 + $0x88] sm:$0xff] %vm1789_vm3, %v1512_v18  ;;  %v2139_v18 = vor.u32 %v2638_v9, %v2138_v8 }
 0x134   : > { %v3136_v25 = vpop.f32.mrf.mxu3 }
 0x136   : > { %v1519_v28 = vpop.f32.mrf.mxu1  ;;  %v1342_v32 = vpop.f32.mrf.mxu2 }
 0x137   : > { %v1672_v31 = vadd.f32 %v3088_v40, %v1342_v32  ;;  %v2707_v32 = vld [vmem:[%s2810_s25 + $0x364] sm:$0xf] }
 0x138   : > { %v1185_v34 = vpop.f32.mrf.mxu0 }
 0x139   : > { %2550 = vmatmul.msk.bf16.gmra.mxu1 %vm931_vm2, %v2135_v22  ;;  %v1515_v36 = vadd.f32 %v1514_v2, %v1185_v34  ;;  %2583 = vmatmul.msk.bf16.gmra.mxu3 %vm931_vm2, %v2399_v30  ;;  %1871 = vst.msk [vmem:[%s2929_s11 + $0x288] sm:$0xff] %vm1789_vm3, %v1672_v31  ;;  %v2156_v30 = vld [vmem:[%s2810_s25 + $0x158] sm:$0xf0]  ;;  %v2146_v34 = vld [vmem:[%s2810_s25 + $0x140] sm:$0xf] }
 0x13a   : > { %v2159_v31 = vor.u32 %v2641_v27, %v2156_v30 }
 0x13b   : > { %1808 = vst.msk [vmem:[%s2929_s11 + $0x90] sm:$0xff] %vm1789_vm3, %v1515_v36  ;;  %1224 = vmatmul.bf16.gmra.mxu0 %v2123_v33  ;;  %1384 = vmatmul.bf16.gmra.mxu2 %v2379_v35  ;;  %v2420_v33 = vld [vmem:[%s2810_s25 + $0x368] sm:$0xf0]  ;;  %v2640_v35 = vld [vmem:[%s2810_s25 + $0x144] sm:$0xf0] }
 0x13c   : > { %v3147_v37 = vpop.f32.mrf.mxu3 }
 0x13e   : > { %v1521_v38 = vpop.f32.mrf.mxu1  ;;  %v1345_v39 = vpop.f32.mrf.mxu2 }
 0x13f   : > { %v1675_v40 = vadd.f32 %v3099_v51, %v1345_v39  ;;  %v2700_v51 = vld [vmem:[%s2810_s25 + $0x324] sm:$0xf0]  ;;  %v2402_v39 = vld [vmem:[%s2810_s25 + $0x340] sm:$0xf] }
 0x140   : > { %v1187_v42 = vpop.f32.mrf.mxu0  ;;  %v2387_v59 = vor.u32 %v2700_v51, %v2386_v53  ;;  %v2643_v51 = vld [vmem:[%s2810_s25 + $0x164] sm:$0xf] }
 0x141   : > { %v1517_v43 = vadd.f32 %v1516_v13, %v1187_v42  ;;  %1872 = vst.msk [vmem:[%s2929_s11 + $0x290] sm:$0xff] %vm1789_vm3, %v1675_v40  ;;  %v2423_v40 = vor.u32 %v2707_v32, %v2420_v33 }
 0x143   : > { %1809 = vst.msk [vmem:[%s2929_s11 + $0x98] sm:$0xff] %vm1789_vm3, %v1517_v43  ;;  %v2147_v43 = vor.u32 %v2640_v35, %v2146_v34 }
 0x144   : > { %v3160_v50 = vpop.f32.mrf.mxu3 }
 0x146   : > { %v1524_v52 = vpop.f32.mrf.mxu1  ;;  %v1347_v56 = vpop.f32.mrf.mxu2 }
 0x147   : > { %v1677_v55 = vadd.f32 %v3112_v0, %v1347_v56  ;;  %v2709_v56 = vld [vmem:[%s2810_s25 + $0x374] sm:$0xf] }
 0x148   : > { %v1190_v58 = vpop.f32.mrf.mxu0 }
 0x149   : > { %2551 = vmatmul.msk.bf16.gmra.mxu1 %vm931_vm2, %v2143_v47  ;;  %v1520_v60 = vadd.f32 %v1519_v28, %v1190_v58  ;;  %2584 = vmatmul.msk.bf16.gmra.mxu3 %vm931_vm2, %v2407_v54  ;;  %1873 = vst.msk [vmem:[%s2929_s11 + $0x298] sm:$0xff] %vm1789_vm3, %v1677_v55  ;;  %v2164_v54 = vld [vmem:[%s2810_s25 + $0x168] sm:$0xf0]  ;;  %v2154_v58 = vld [vmem:[%s2810_s25 + $0x150] sm:$0xf] }
 0x14a   : > { %v2167_v55 = vor.u32 %v2643_v51, %v2164_v54 }
 0x14b   : > { %1810 = vst.msk [vmem:[%s2929_s11 + $0xa0] sm:$0xff] %vm1789_vm3, %v1520_v60  ;;  %1229 = vmatmul.bf16.gmra.mxu0 %v2131_v57  ;;  %1389 = vmatmul.bf16.gmra.mxu2 %v2387_v59  ;;  %v2428_v57 = vld [vmem:[%s2810_s25 + $0x378] sm:$0xf0]  ;;  %v2642_v59 = vld [vmem:[%s2810_s25 + $0x154] sm:$0xf0] }
 0x14c   : > { %v3171_v61 = vpop.f32.mrf.mxu3 }
 0x14e   : > { %v1526_v62 = vpop.f32.mrf.mxu1  ;;  %v1350_v63 = vpop.f32.mrf.mxu2 }
 0x14f   : > { %v1680_v0 = vadd.f32 %v3123_v12, %v1350_v63  ;;  %v2702_v12 = vld [vmem:[%s2810_s25 + $0x334] sm:$0xf0]  ;;  %v2410_v63 = vld [vmem:[%s2810_s25 + $0x350] sm:$0xf] }
 0x150   : > { %v1192_v2 = vpop.f32.mrf.mxu0  ;;  %v2395_v20 = vor.u32 %v2702_v12, %v2394_v14  ;;  %v2645_v12 = vld [vmem:[%s2810_s25 + $0x174] sm:$0xf] }
 0x151   : > { %v1522_v3 = vadd.f32 %v1521_v38, %v1192_v2  ;;  %1874 = vst.msk [vmem:[%s2929_s11 + $0x2a0] sm:$0xff] %vm1789_vm3, %v1680_v0  ;;  %v2431_v0 = vor.u32 %v2709_v56, %v2428_v57 }
 0x153   : > { %1811 = vst.msk [vmem:[%s2929_s11 + $0xa8] sm:$0xff] %vm1789_vm3, %v1522_v3  ;;  %v2155_v3 = vor.u32 %v2642_v59, %v2154_v58 }
 0x154   : > { %v3184_v10 = vpop.f32.mrf.mxu3 }
 0x156   : > { %v1529_v13 = vpop.f32.mrf.mxu1  ;;  %v1352_v17 = vpop.f32.mrf.mxu2 }
 0x157   : > { %v1682_v16 = vadd.f32 %v3136_v25, %v1352_v17  ;;  %v2711_v17 = vld [vmem:[%s2810_s25 + $0x384] sm:$0xf] }
 0x158   : > { %v1195_v19 = vpop.f32.mrf.mxu0 }
 0x159   : > { %2552 = vmatmul.msk.bf16.gmra.mxu1 %vm931_vm2, %v2151_v7  ;;  %v1525_v21 = vadd.f32 %v1524_v52, %v1195_v19  ;;  %2585 = vmatmul.msk.bf16.gmra.mxu3 %vm931_vm2, %v2415_v15  ;;  %1875 = vst.msk [vmem:[%s2929_s11 + $0x2a8] sm:$0xff] %vm1789_vm3, %v1682_v16  ;;  %v2172_v15 = vld [vmem:[%s2810_s25 + $0x178] sm:$0xf0]  ;;  %v2162_v19 = vld [vmem:[%s2810_s25 + $0x160] sm:$0xf] }
 0x15a   : > { %v2175_v16 = vor.u32 %v2645_v12, %v2172_v15 }
 0x15b   : > { %1812 = vst.msk [vmem:[%s2929_s11 + $0xb0] sm:$0xff] %vm1789_vm3, %v1525_v21  ;;  %1234 = vmatmul.bf16.gmra.mxu0 %v2139_v18  ;;  %1394 = vmatmul.bf16.gmra.mxu2 %v2395_v20  ;;  %v2436_v18 = vld [vmem:[%s2810_s25 + $0x388] sm:$0xf0]  ;;  %v2644_v20 = vld [vmem:[%s2810_s25 + $0x164] sm:$0xf0] }
 0x15c   : > { %v3195_v22 = vpop.f32.mrf.mxu3 }
 0x15e   : > { %v1531_v23 = vpop.f32.mrf.mxu1  ;;  %v1355_v24 = vpop.f32.mrf.mxu2 }
 0x15f   : > { %v1685_v25 = vadd.f32 %v3147_v37, %v1355_v24  ;;  %v2704_v37 = vld [vmem:[%s2810_s25 + $0x344] sm:$0xf0]  ;;  %v2418_v24 = vld [vmem:[%s2810_s25 + $0x360] sm:$0xf] }
 0x160   : > { %v1197_v28 = vpop.f32.mrf.mxu0  ;;  %v2403_v45 = vor.u32 %v2704_v37, %v2402_v39  ;;  %v2647_v37 = vld [vmem:[%s2810_s25 + $0x184] sm:$0xf] }
 0x161   : > { %v1527_v29 = vadd.f32 %v1526_v62, %v1197_v28  ;;  %1876 = vst.msk [vmem:[%s2929_s11 + $0x2b0] sm:$0xff] %vm1789_vm3, %v1685_v25  ;;  %v2439_v25 = vor.u32 %v2711_v17, %v2436_v18 }
 0x163   : > { %1813 = vst.msk [vmem:[%s2929_s11 + $0xb8] sm:$0xff] %vm1789_vm3, %v1527_v29  ;;  %v2163_v29 = vor.u32 %v2644_v20, %v2162_v19 }
 0x164   : > { %v3208_v36 = vpop.f32.mrf.mxu3 }
 0x166   : > { %v1534_v38 = vpop.f32.mrf.mxu1  ;;  %v1357_v42 = vpop.f32.mrf.mxu2 }
 0x167   : > { %v1687_v41 = vadd.f32 %v3160_v50, %v1357_v42  ;;  %v2713_v42 = vld [vmem:[%s2810_s25 + $0x394] sm:$0xf] }
 0x168   : > { %v1200_v44 = vpop.f32.mrf.mxu0 }
 0x169   : > { %2553 = vmatmul.msk.bf16.gmra.mxu1 %vm931_vm2, %v2159_v31  ;;  %v1530_v46 = vadd.f32 %v1529_v13, %v1200_v44  ;;  %2586 = vmatmul.msk.bf16.gmra.mxu3 %vm931_vm2, %v2423_v40  ;;  %1877 = vst.msk [vmem:[%s2929_s11 + $0x2b8] sm:$0xff] %vm1789_vm3, %v1687_v41  ;;  %v2180_v40 = vld [vmem:[%s2810_s25 + $0x188] sm:$0xf0]  ;;  %v2170_v44 = vld [vmem:[%s2810_s25 + $0x170] sm:$0xf] }
 0x16a   : > { %v2183_v41 = vor.u32 %v2647_v37, %v2180_v40 }
 0x16b   : > { %1814 = vst.msk [vmem:[%s2929_s11 + $0xc0] sm:$0xff] %vm1789_vm3, %v1530_v46  ;;  %1239 = vmatmul.bf16.gmra.mxu0 %v2147_v43  ;;  %1399 = vmatmul.bf16.gmra.mxu2 %v2403_v45  ;;  %v2444_v43 = vld [vmem:[%s2810_s25 + $0x398] sm:$0xf0]  ;;  %v2646_v45 = vld [vmem:[%s2810_s25 + $0x174] sm:$0xf0] }
 0x16c   : > { %v3219_v47 = vpop.f32.mrf.mxu3 }
 0x16e   : > { %v1536_v48 = vpop.f32.mrf.mxu1  ;;  %v1360_v49 = vpop.f32.mrf.mxu2 }
 0x16f   : > { %v1690_v50 = vadd.f32 %v3171_v61, %v1360_v49  ;;  %v2706_v61 = vld [vmem:[%s2810_s25 + $0x354] sm:$0xf0]  ;;  %v2426_v49 = vld [vmem:[%s2810_s25 + $0x370] sm:$0xf] }
 0x170   : > { %v1202_v52 = vpop.f32.mrf.mxu0  ;;  %v2411_v5 = vor.u32 %v2706_v61, %v2410_v63  ;;  %v2649_v61 = vld [vmem:[%s2810_s25 + $0x194] sm:$0xf] }
 0x171   : > { %v1532_v53 = vadd.f32 %v1531_v23, %v1202_v52  ;;  %1878 = vst.msk [vmem:[%s2929_s11 + $0x2c0] sm:$0xff] %vm1789_vm3, %v1690_v50  ;;  %v2447_v50 = vor.u32 %v2713_v42, %v2444_v43 }
 0x173   : > { %1815 = vst.msk [vmem:[%s2929_s11 + $0xc8] sm:$0xff] %vm1789_vm3, %v1532_v53  ;;  %v2171_v53 = vor.u32 %v2646_v45, %v2170_v44 }
 0x174   : > { %v3232_v60 = vpop.f32.mrf.mxu3 }
 0x176   : > { %v1539_v62 = vpop.f32.mrf.mxu1  ;;  %v1362_v2 = vpop.f32.mrf.mxu2 }
 0x177   : > { %v1692_v1 = vadd.f32 %v3184_v10, %v1362_v2  ;;  %v2715_v2 = vld [vmem:[%s2810_s25 + $0x3a4] sm:$0xf] }
 0x178   : > { %v1205_v4 = vpop.f32.mrf.mxu0 }
 0x179   : > { %2554 = vmatmul.msk.bf16.gmra.mxu1 %vm931_vm2, %v2167_v55  ;;  %v1535_v6 = vadd.f32 %v1534_v38, %v1205_v4  ;;  %2587 = vmatmul.msk.bf16.gmra.mxu3 %vm931_vm2, %v2431_v0  ;;  %1879 = vst.msk [vmem:[%s2929_s11 + $0x2c8] sm:$0xff] %vm1789_vm3, %v1692_v1  ;;  %v2188_v0 = vld [vmem:[%s2810_s25 + $0x198] sm:$0xf0]  ;;  %v2178_v4 = vld [vmem:[%s2810_s25 + $0x180] sm:$0xf] }
 0x17a   : > { %v2191_v1 = vor.u32 %v2649_v61, %v2188_v0 }
 0x17b   : > { %1816 = vst.msk [vmem:[%s2929_s11 + $0xd0] sm:$0xff] %vm1789_vm3, %v1535_v6  ;;  %1244 = vmatmul.bf16.gmra.mxu0 %v2155_v3  ;;  %1404 = vmatmul.bf16.gmra.mxu2 %v2411_v5  ;;  %v2452_v3 = vld [vmem:[%s2810_s25 + $0x3a8] sm:$0xf0]  ;;  %v2648_v5 = vld [vmem:[%s2810_s25 + $0x184] sm:$0xf0] }
 0x17c   : > { %v3243_v7 = vpop.f32.mrf.mxu3 }
 0x17e   : > { %v1541_v8 = vpop.f32.mrf.mxu1  ;;  %v1365_v9 = vpop.f32.mrf.mxu2 }
 0x17f   : > { %v1695_v10 = vadd.f32 %v3195_v22, %v1365_v9  ;;  %v2708_v22 = vld [vmem:[%s2810_s25 + $0x364] sm:$0xf0]  ;;  %v2434_v9 = vld [vmem:[%s2810_s25 + $0x380] sm:$0xf] }
 0x180   : > { %v1207_v13 = vpop.f32.mrf.mxu0  ;;  %v2419_v32 = vor.u32 %v2708_v22, %v2418_v24  ;;  %v2651_v22 = vld [vmem:[%s2810_s25 + $0x1a4] sm:$0xf] }
 0x181   : > { %v1537_v14 = vadd.f32 %v1536_v48, %v1207_v13  ;;  %1880 = vst.msk [vmem:[%s2929_s11 + $0x2d0] sm:$0xff] %vm1789_vm3, %v1695_v10  ;;  %v2455_v10 = vor.u32 %v2715_v2, %v2452_v3 }
 0x183   : > { %1817 = vst.msk [vmem:[%s2929_s11 + $0xd8] sm:$0xff] %vm1789_vm3, %v1537_v14  ;;  %v2179_v14 = vor.u32 %v2648_v5, %v2178_v4 }
 0x184   : > { %v3256_v21 = vpop.f32.mrf.mxu3 }
 0x186   : > { %v1544_v23 = vpop.f32.mrf.mxu1  ;;  %v1367_v28 = vpop.f32.mrf.mxu2 }
 0x187   : > { %v1697_v27 = vadd.f32 %v3208_v36, %v1367_v28  ;;  %v2717_v28 = vld [vmem:[%s2810_s25 + $0x3b4] sm:$0xf] }
 0x188   : > { %v1210_v30 = vpop.f32.mrf.mxu0 }
 0x189   : > { %2555 = vmatmul.msk.bf16.gmra.mxu1 %vm931_vm2, %v2175_v16  ;;  %v1540_v33 = vadd.f32 %v1539_v62, %v1210_v30  ;;  %2588 = vmatmul.msk.bf16.gmra.mxu3 %vm931_vm2, %v2439_v25  ;;  %1881 = vst.msk [vmem:[%s2929_s11 + $0x2d8] sm:$0xff] %vm1789_vm3, %v1697_v27  ;;  %v2196_v25 = vld [vmem:[%s2810_s25 + $0x1a8] sm:$0xf0]  ;;  %v2186_v30 = vld [vmem:[%s2810_s25 + $0x190] sm:$0xf] }
 0x18a   : > { %v2199_v27 = vor.u32 %v2651_v22, %v2196_v25 }
 0x18b   : > { %1818 = vst.msk [vmem:[%s2929_s11 + $0xe0] sm:$0xff] %vm1789_vm3, %v1540_v33  ;;  %1249 = vmatmul.bf16.gmra.mxu0 %v2163_v29  ;;  %1409 = vmatmul.bf16.gmra.mxu2 %v2419_v32  ;;  %v2460_v29 = vld [vmem:[%s2810_s25 + $0x3b8] sm:$0xf0]  ;;  %v2650_v32 = vld [vmem:[%s2810_s25 + $0x194] sm:$0xf0] }
 0x18c   : > { %v3267_v31 = vpop.f32.mrf.mxu3 }
 0x18e   : > { %v1546_v34 = vpop.f32.mrf.mxu1  ;;  %v1370_v35 = vpop.f32.mrf.mxu2 }
 0x18f   : > { %v1700_v36 = vadd.f32 %v3219_v47, %v1370_v35  ;;  %v2710_v47 = vld [vmem:[%s2810_s25 + $0x374] sm:$0xf0]  ;;  %v2442_v35 = vld [vmem:[%s2810_s25 + $0x390] sm:$0xf] }
 0x190   : > { %v1212_v38 = vpop.f32.mrf.mxu0  ;;  %v2427_v56 = vor.u32 %v2710_v47, %v2426_v49  ;;  %v2653_v47 = vld [vmem:[%s2810_s25 + $0x1b4] sm:$0xf] }
 0x191   : > { %v1542_v39 = vadd.f32 %v1541_v8, %v1212_v38  ;;  %1882 = vst.msk [vmem:[%s2929_s11 + $0x2e0] sm:$0xff] %vm1789_vm3, %v1700_v36  ;;  %v2463_v36 = vor.u32 %v2717_v28, %v2460_v29 }
 0x193   : > { %1819 = vst.msk [vmem:[%s2929_s11 + $0xe8] sm:$0xff] %vm1789_vm3, %v1542_v39  ;;  %v2187_v39 = vor.u32 %v2650_v32, %v2186_v30 }
 0x194   : > { %v3280_v46 = vpop.f32.mrf.mxu3 }
 0x196   : > { %v1549_v48 = vpop.f32.mrf.mxu1  ;;  %v1372_v52 = vpop.f32.mrf.mxu2 }
 0x197   : > { %v1702_v51 = vadd.f32 %v3232_v60, %v1372_v52  ;;  %v2719_v52 = vld [vmem:[%s2810_s25 + $0x3c4] sm:$0xf] }
 0x198   : > { %v1215_v54 = vpop.f32.mrf.mxu0 }
 0x199   : > { %2556 = vmatmul.msk.bf16.gmra.mxu1 %vm931_vm2, %v2183_v41  ;;  %v1545_v57 = vadd.f32 %v1544_v23, %v1215_v54  ;;  %2589 = vmatmul.msk.bf16.gmra.mxu3 %vm931_vm2, %v2447_v50  ;;  %1883 = vst.msk [vmem:[%s2929_s11 + $0x2e8] sm:$0xff] %vm1789_vm3, %v1702_v51  ;;  %v2204_v50 = vld [vmem:[%s2810_s25 + $0x1b8] sm:$0xf0]  ;;  %v2194_v54 = vld [vmem:[%s2810_s25 + $0x1a0] sm:$0xf] }
 0x19a   : > { %v2207_v51 = vor.u32 %v2653_v47, %v2204_v50 }
 0x19b   : > { %1820 = vst.msk [vmem:[%s2929_s11 + $0xf0] sm:$0xff] %vm1789_vm3, %v1545_v57  ;;  %1254 = vmatmul.bf16.gmra.mxu0 %v2171_v53  ;;  %1414 = vmatmul.bf16.gmra.mxu2 %v2427_v56  ;;  %v2468_v53 = vld [vmem:[%s2810_s25 + $0x3c8] sm:$0xf0]  ;;  %v2652_v56 = vld [vmem:[%s2810_s25 + $0x1a4] sm:$0xf0] }
 0x19c   : > { %v3291_v55 = vpop.f32.mrf.mxu3 }
 0x19e   : > { %v1551_v58 = vpop.f32.mrf.mxu1  ;;  %v1375_v59 = vpop.f32.mrf.mxu2 }
 0x19f   : > { %v1705_v60 = vadd.f32 %v3243_v7, %v1375_v59  ;;  %v2712_v7 = vld [vmem:[%s2810_s25 + $0x384] sm:$0xf0]  ;;  %v2450_v59 = vld [vmem:[%s2810_s25 + $0x3a0] sm:$0xf] }
 0x1a0   : > { %v1217_v62 = vpop.f32.mrf.mxu0  ;;  %v2435_v17 = vor.u32 %v2712_v7, %v2434_v9  ;;  %v2655_v7 = vld [vmem:[%s2810_s25 + $0x1c4] sm:$0xf] }
 0x1a1   : > { %v1547_v63 = vadd.f32 %v1546_v34, %v1217_v62  ;;  %1884 = vst.msk [vmem:[%s2929_s11 + $0x2f0] sm:$0xff] %vm1789_vm3, %v1705_v60  ;;  %v2471_v60 = vor.u32 %v2719_v52, %v2468_v53 }
 0x1a3   : > { %1821 = vst.msk [vmem:[%s2929_s11 + $0xf8] sm:$0xff] %vm1789_vm3, %v1547_v63  ;;  %v2195_v63 = vor.u32 %v2652_v56, %v2194_v54 }
 0x1a4   : > { %v3304_v6 = vpop.f32.mrf.mxu3 }
 0x1a6   : > { %v1554_v8 = vpop.f32.mrf.mxu1  ;;  %v1377_v13 = vpop.f32.mrf.mxu2 }
 0x1a7   : > { %v1707_v12 = vadd.f32 %v3256_v21, %v1377_v13  ;;  %v2721_v13 = vld [vmem:[%s2810_s25 + $0x3d4] sm:$0xf] }
 0x1a8   : > { %v1220_v15 = vpop.f32.mrf.mxu0 }
 0x1a9   : > { %2557 = vmatmul.msk.bf16.gmra.mxu1 %vm931_vm2, %v2191_v1  ;;  %v1550_v18 = vadd.f32 %v1549_v48, %v1220_v15  ;;  %2590 = vmatmul.msk.bf16.gmra.mxu3 %vm931_vm2, %v2455_v10  ;;  %1885 = vst.msk [vmem:[%s2929_s11 + $0x2f8] sm:$0xff] %vm1789_vm3, %v1707_v12  ;;  %v2212_v10 = vld [vmem:[%s2810_s25 + $0x1c8] sm:$0xf0]  ;;  %v2202_v15 = vld [vmem:[%s2810_s25 + $0x1b0] sm:$0xf] }
 0x1aa   : > { %v2215_v12 = vor.u32 %v2655_v7, %v2212_v10 }
 0x1ab   : > { %1822 = vst.msk [vmem:[%s2929_s11 + $0x100] sm:$0xff] %vm1789_vm3, %v1550_v18  ;;  %1259 = vmatmul.bf16.gmra.mxu0 %v2179_v14  ;;  %1419 = vmatmul.bf16.gmra.mxu2 %v2435_v17  ;;  %v2476_v14 = vld [vmem:[%s2810_s25 + $0x3d8] sm:$0xf0]  ;;  %v2654_v17 = vld [vmem:[%s2810_s25 + $0x1b4] sm:$0xf0] }
 0x1ac   : > { %v3315_v16 = vpop.f32.mrf.mxu3 }
 0x1ae   : > { %v1556_v19 = vpop.f32.mrf.mxu1  ;;  %v1380_v20 = vpop.f32.mrf.mxu2 }
 0x1af   : > { %v1710_v21 = vadd.f32 %v3267_v31, %v1380_v20  ;;  %v2714_v31 = vld [vmem:[%s2810_s25 + $0x394] sm:$0xf0]  ;;  %v2458_v20 = vld [vmem:[%s2810_s25 + $0x3b0] sm:$0xf] }
 0x1b0   : > { %v1222_v23 = vpop.f32.mrf.mxu0  ;;  %v2443_v42 = vor.u32 %v2714_v31, %v2442_v35  ;;  %v2657_v31 = vld [vmem:[%s2810_s25 + $0x1d4] sm:$0xf] }
 0x1b1   : > { %v1552_v24 = vadd.f32 %v1551_v58, %v1222_v23  ;;  %1886 = vst.msk [vmem:[%s2929_s11 + $0x300] sm:$0xff] %vm1789_vm3, %v1710_v21  ;;  %v2479_v21 = vor.u32 %v2721_v13, %v2476_v14 }
 0x1b3   : > { %1823 = vst.msk [vmem:[%s2929_s11 + $0x108] sm:$0xff] %vm1789_vm3, %v1552_v24  ;;  %v2203_v24 = vor.u32 %v2654_v17, %v2202_v15 }
 0x1b4   : > { %v3328_v33 = vpop.f32.mrf.mxu3 }
 0x1b6   : > { %v1559_v34 = vpop.f32.mrf.mxu1  ;;  %v1382_v38 = vpop.f32.mrf.mxu2 }
 0x1b7   : > { %v1712_v37 = vadd.f32 %v3280_v46, %v1382_v38  ;;  %v2723_v38 = vld [vmem:[%s2810_s25 + $0x3e4] sm:$0xf] }
 0x1b8   : > { %v1225_v40 = vpop.f32.mrf.mxu0 }
 0x1b9   : > { %2558 = vmatmul.msk.bf16.gmra.mxu1 %vm931_vm2, %v2199_v27  ;;  %v1555_v43 = vadd.f32 %v1554_v8, %v1225_v40  ;;  %2591 = vmatmul.msk.bf16.gmra.mxu3 %vm931_vm2, %v2463_v36  ;;  %1887 = vst.msk [vmem:[%s2929_s11 + $0x308] sm:$0xff] %vm1789_vm3, %v1712_v37  ;;  %v2220_v36 = vld [vmem:[%s2810_s25 + $0x1d8] sm:$0xf0]  ;;  %v2210_v40 = vld [vmem:[%s2810_s25 + $0x1c0] sm:$0xf] }
 0x1ba   : > { %v2223_v37 = vor.u32 %v2657_v31, %v2220_v36 }
 0x1bb   : > { %1824 = vst.msk [vmem:[%s2929_s11 + $0x110] sm:$0xff] %vm1789_vm3, %v1555_v43  ;;  %1264 = vmatmul.bf16.gmra.mxu0 %v2187_v39  ;;  %1424 = vmatmul.bf16.gmra.mxu2 %v2443_v42  ;;  %v2484_v39 = vld [vmem:[%s2810_s25 + $0x3e8] sm:$0xf0]  ;;  %v2656_v42 = vld [vmem:[%s2810_s25 + $0x1c4] sm:$0xf0] }
 0x1bc   : > { %v3339_v41 = vpop.f32.mrf.mxu3 }
 0x1be   : > { %v1561_v44 = vpop.f32.mrf.mxu1  ;;  %v1385_v45 = vpop.f32.mrf.mxu2 }
 0x1bf   : > { %v1715_v46 = vadd.f32 %v3291_v55, %v1385_v45  ;;  %v2716_v55 = vld [vmem:[%s2810_s25 + $0x3a4] sm:$0xf0]  ;;  %v2466_v45 = vld [vmem:[%s2810_s25 + $0x3c0] sm:$0xf] }
 0x1c0   : > { %v1227_v48 = vpop.f32.mrf.mxu0  ;;  %v2451_v2 = vor.u32 %v2716_v55, %v2450_v59  ;;  %v2659_v55 = vld [vmem:[%s2810_s25 + $0x1e4] sm:$0xf] }
 0x1c1   : > { %v1557_v49 = vadd.f32 %v1556_v19, %v1227_v48  ;;  %1888 = vst.msk [vmem:[%s2929_s11 + $0x310] sm:$0xff] %vm1789_vm3, %v1715_v46  ;;  %v2487_v46 = vor.u32 %v2723_v38, %v2484_v39 }
 0x1c3   : > { %1825 = vst.msk [vmem:[%s2929_s11 + $0x118] sm:$0xff] %vm1789_vm3, %v1557_v49  ;;  %v2211_v49 = vor.u32 %v2656_v42, %v2210_v40  ;;  %v2663_v42 = vld [vmem:[%s2810_s25 + $0x204] sm:$0xf] }
 0x1c4   : > { %v3352_v57 = vpop.f32.mrf.mxu3 }
 0x1c6   : > { %v1564_v58 = vpop.f32.mrf.mxu1  ;;  %v1387_v62 = vpop.f32.mrf.mxu2 }
 0x1c7   : > { %v1717_v61 = vadd.f32 %v3304_v6, %v1387_v62  ;;  %v2725_v62 = vld [vmem:[%s2810_s25 + $0x3f4] sm:$0xf] }
 0x1c8   : > { %v1230_v0 = vpop.f32.mrf.mxu0 }
 0x1c9   : > { %2559 = vmatmul.msk.bf16.gmra.mxu1 %vm931_vm2, %v2207_v51  ;;  %v1560_v3 = vadd.f32 %v1559_v34, %v1230_v0  ;;  %2592 = vmatmul.msk.bf16.gmra.mxu3 %vm931_vm2, %v2471_v60  ;;  %1889 = vst.msk [vmem:[%s2929_s11 + $0x318] sm:$0xff] %vm1789_vm3, %v1717_v61  ;;  %v2228_v60 = vld [vmem:[%s2810_s25 + $0x1e8] sm:$0xf0]  ;;  %v2218_v0 = vld [vmem:[%s2810_s25 + $0x1d0] sm:$0xf] }
 0x1ca   : > { %v2231_v61 = vor.u32 %v2659_v55, %v2228_v60 }
 0x1cb   : > { %1826 = vst.msk [vmem:[%s2929_s11 + $0x120] sm:$0xff] %vm1789_vm3, %v1560_v3  ;;  %1269 = vmatmul.bf16.gmra.mxu0 %v2195_v63  ;;  %1429 = vmatmul.bf16.gmra.mxu2 %v2451_v2  ;;  %v2492_v63 = vld [vmem:[%s2810_s25 + $0x3f8] sm:$0xf0]  ;;  %v2658_v2 = vld [vmem:[%s2810_s25 + $0x1d4] sm:$0xf0] }
 0x1cc   : > { %v3363_v1 = vpop.f32.mrf.mxu3 }
 0x1ce   : > { %v1566_v4 = vpop.f32.mrf.mxu1  ;;  %v1390_v5 = vpop.f32.mrf.mxu2 }
 0x1cf   : > { %v1720_v6 = vadd.f32 %v3315_v16, %v1390_v5  ;;  %v2718_v16 = vld [vmem:[%s2810_s25 + $0x3b4] sm:$0xf0]  ;;  %v2474_v5 = vld [vmem:[%s2810_s25 + $0x3d0] sm:$0xf] }
 0x1d0   : > { %v1232_v8 = vpop.f32.mrf.mxu0  ;;  %v2459_v28 = vor.u32 %v2718_v16, %v2458_v20  ;;  %v2661_v16 = vld [vmem:[%s2810_s25 + $0x1f4] sm:$0xf] }
 0x1d1   : > { %v1562_v9 = vadd.f32 %v1561_v44, %v1232_v8  ;;  %1890 = vst.msk [vmem:[%s2929_s11 + $0x320] sm:$0xff] %vm1789_vm3, %v1720_v6  ;;  %v2495_v6 = vor.u32 %v2725_v62, %v2492_v63 }
 0x1d3   : > { %1827 = vst.msk [vmem:[%s2929_s11 + $0x128] sm:$0xff] %vm1789_vm3, %v1562_v9  ;;  %v2219_v9 = vor.u32 %v2658_v2, %v2218_v0 }
 0x1d4   : > { %v3376_v18 = vpop.f32.mrf.mxu3 }
 0x1d6   : > { %v1569_v19 = vpop.f32.mrf.mxu1  ;;  %v1392_v23 = vpop.f32.mrf.mxu2 }
 0x1d7   : > { %v1722_v22 = vadd.f32 %v3328_v33, %v1392_v23 }
 0x1d8   : > { %v1235_v25 = vpop.f32.mrf.mxu0 }
 0x1d9   : > { %2560 = vmatmul.msk.bf16.gmra.mxu1 %vm931_vm2, %v2215_v12  ;;  %v1565_v29 = vadd.f32 %v1564_v58, %v1235_v25  ;;  %2593 = vmatmul.msk.bf16.gmra.mxu3 %vm931_vm2, %v2479_v21  ;;  %1891 = vst.msk [vmem:[%s2929_s11 + $0x328] sm:$0xff] %vm1789_vm3, %v1722_v22  ;;  %v2236_v21 = vld [vmem:[%s2810_s25 + $0x1f8] sm:$0xf0]  ;;  %v2660_v22 = vld [vmem:[%s2810_s25 + $0x1e4] sm:$0xf0] }
 0x1da   : > { %v2239_v23 = vor.u32 %v2661_v16, %v2236_v21 }
 0x1db   : > { %1828 = vst.msk [vmem:[%s2929_s11 + $0x130] sm:$0xff] %vm1789_vm3, %v1565_v29  ;;  %1274 = vmatmul.bf16.gmra.mxu0 %v2203_v24  ;;  %1434 = vmatmul.bf16.gmra.mxu2 %v2459_v28  ;;  %v2226_v24 = vld [vmem:[%s2810_s25 + $0x1e0] sm:$0xf]  ;;  %v2724_v29 = vld [vmem:[%s2810_s25 + $0x3e4] sm:$0xf0] }
 0x1dc   : > { %v3387_v27 = vpop.f32.mrf.mxu3  ;;  %v2482_v28 = vld [vmem:[%s2810_s25 + $0x3e0] sm:$0xf] }
 0x1de   : > { %v1571_v30 = vpop.f32.mrf.mxu1  ;;  %v1395_v32 = vpop.f32.mrf.mxu2 }
 0x1df   : > { %v1725_v33 = vadd.f32 %v3339_v41, %v1395_v32  ;;  %v2720_v41 = vld [vmem:[%s2810_s25 + $0x3c4] sm:$0xf0]  ;;  %v2227_v32 = vor.u32 %v2660_v22, %v2226_v24 }
 0x1e0   : > { %v1237_v34 = vpop.f32.mrf.mxu0  ;;  %v2467_v52 = vor.u32 %v2720_v41, %v2466_v45  ;;  %v2234_v41 = vld [vmem:[%s2810_s25 + $0x1f0] sm:$0xf] }
 0x1e1   : > { %v1567_v35 = vadd.f32 %v1566_v4, %v1237_v34  ;;  %1892 = vst.msk [vmem:[%s2929_s11 + $0x330] sm:$0xff] %vm1789_vm3, %v1725_v33 }
 0x1e3   : > { %1829 = vst.msk [vmem:[%s2929_s11 + $0x138] sm:$0xff] %vm1789_vm3, %v1567_v35  ;;  %v2483_v35 = vor.u32 %v2724_v29, %v2482_v28 }
 0x1e4   : > { %v3400_v43 = vpop.f32.mrf.mxu3 }
 0x1e6   : > { %v1574_v44 = vpop.f32.mrf.mxu1  ;;  %v1397_v48 = vpop.f32.mrf.mxu2 }
 0x1e7   : > { %v1727_v47 = vadd.f32 %v3352_v57, %v1397_v48 }
 0x1e8   : > { %v1240_v50 = vpop.f32.mrf.mxu0 }
 0x1e9   : > { %2561 = vmatmul.msk.bf16.gmra.mxu1 %vm931_vm2, %v2223_v37  ;;  %v1570_v53 = vadd.f32 %v1569_v19, %v1240_v50  ;;  %2594 = vmatmul.msk.bf16.gmra.mxu3 %vm931_vm2, %v2487_v46  ;;  %1893 = vst.msk [vmem:[%s2929_s11 + $0x338] sm:$0xff] %vm1789_vm3, %v1727_v47  ;;  %v2662_v46 = vld [vmem:[%s2810_s25 + $0x1f4] sm:$0xf0] }
 0x1ea   : > { %v2726_v47 = vld [vmem:[%s2810_s25 + $0x3f4] sm:$0xf0] }
 0x1eb   : > { %1830 = vst.msk [vmem:[%s2929_s11 + $0x140] sm:$0xff] %vm1789_vm3, %v1570_v53  ;;  %1279 = vmatmul.bf16.gmra.mxu0 %v2211_v49  ;;  %1439 = vmatmul.bf16.gmra.mxu2 %v2467_v52  ;;  %v2490_v49 = vld [vmem:[%s2810_s25 + $0x3f0] sm:$0xf]  ;;  %v2235_v52 = vor.u32 %v2662_v46, %v2234_v41 }
 0x1ec   : > { %v1739_v51 = vpop.f32.mrf.mxu3 }
 0x1ee   : > { %v1576_v54 = vpop.f32.mrf.mxu1  ;;  %v1400_v56 = vpop.f32.mrf.mxu2 }
 0x1ef   : > { %v1730_v57 = vadd.f32 %v3363_v1, %v1400_v56  ;;  %v2722_v1 = vld [vmem:[%s2810_s25 + $0x3d4] sm:$0xf0] }
 0x1f0   : > { %v1242_v58 = vpop.f32.mrf.mxu0  ;;  %v2475_v13 = vor.u32 %v2722_v1, %v2474_v5 }
 0x1f1   : > { %v1572_v59 = vadd.f32 %v1571_v30, %v1242_v58  ;;  %1894 = vst.msk [vmem:[%s2929_s11 + $0x340] sm:$0xff] %vm1789_vm3, %v1730_v57 }
 0x1f3   : > { %1831 = vst.msk [vmem:[%s2929_s11 + $0x148] sm:$0xff] %vm1789_vm3, %v1572_v59 }
 0x1f4   : > { %v3422_v3 = vpop.f32.mrf.mxu3 }
 0x1f6   : > { %v1579_v4 = vpop.f32.mrf.mxu1  ;;  %v1402_v8 = vpop.f32.mrf.mxu2 }
 0x1f7   : > { %v1732_v7 = vadd.f32 %v3376_v18, %v1402_v8 }
 0x1f8   : > { %v1245_v10 = vpop.f32.mrf.mxu0 }
 0x1f9   : > { %2562 = vmatmul.msk.bf16.gmra.mxu1 %vm931_vm2, %v2231_v61  ;;  %v1575_v14 = vadd.f32 %v1574_v44, %v1245_v10  ;;  %2595 = vmatmul.msk.bf16.gmra.mxu3 %vm931_vm2, %v2495_v6  ;;  %1895 = vst.msk [vmem:[%s2929_s11 + $0x348] sm:$0xff] %vm1789_vm3, %v1732_v7 }
 0x1fb   : > { %1832 = vst.msk [vmem:[%s2929_s11 + $0x150] sm:$0xff] %vm1789_vm3, %v1575_v14  ;;  %1284 = vmatmul.bf16.gmra.mxu0 %v2219_v9  ;;  %1444 = vmatmul.bf16.gmra.mxu2 %v2475_v13 }
 0x1fc   : > { %v1744_v15 = vpop.f32.mrf.mxu3 }
 0x1fe   : > { %v1581_v12 = vpop.f32.mrf.mxu1  ;;  %v1405_v17 = vpop.f32.mrf.mxu2 }
 0x1ff   : > { %v1735_v18 = vadd.f32 %v3387_v27, %v1405_v17 }
 0x200   : > { %v1247_v19 = vpop.f32.mrf.mxu0 }
 0x201   : > { %v1577_v20 = vadd.f32 %v1576_v54, %v1247_v19  ;;  %1896 = vst.msk [vmem:[%s2929_s11 + $0x350] sm:$0xff] %vm1789_vm3, %v1735_v18  ;;  %v2491_v54 = vor.u32 %v2726_v47, %v2490_v49 }
 0x203   : > { %1833 = vst.msk [vmem:[%s2929_s11 + $0x158] sm:$0xff] %vm1789_vm3, %v1577_v20 }
 0x204   : > { %v1746_v27 = vpop.f32.mrf.mxu3 }
 0x206   : > { %v1584_v25 = vpop.f32.mrf.mxu1  ;;  %v1407_v30 = vpop.f32.mrf.mxu2 }
 0x207   : > { %v1737_v33 = vadd.f32 %v3400_v43, %v1407_v30  ;;  %v2244_v43 = vld [vmem:[%s2810_s25 + $0x208] sm:$0xf0] }
 0x208   : > { %v1250_v34 = vpop.f32.mrf.mxu0  ;;  %v2247_v45 = vor.u32 %v2663_v42, %v2244_v43 }
 0x209   : > { %2563 = vmatmul.msk.bf16.gmra.mxu1 %vm931_vm2, %v2239_v23  ;;  %v1580_v31 = vadd.f32 %v1579_v4, %v1250_v34  ;;  %1897 = vst.msk [vmem:[%s2929_s11 + $0x358] sm:$0xff] %vm1789_vm3, %v1737_v33 }
 0x20b   : > { %1834 = vst.msk [vmem:[%s2929_s11 + $0x160] sm:$0xff] %vm1789_vm3, %v1580_v31  ;;  %1289 = vmatmul.bf16.gmra.mxu0 %v2227_v32  ;;  %1449 = vmatmul.bf16.gmra.mxu2 %v2483_v35 }
 0x20c   : > { %v1749_v44 = vpop.f32.mrf.mxu3 }
 0x20e   : > { %v1586_v36 = vpop.f32.mrf.mxu1  ;;  %v1410_v38 = vpop.f32.mrf.mxu2 }
 0x20f   : > { %v1740_v39 = vadd.f32 %v1739_v51, %v1410_v38 }
 0x210   : > { %v1252_v37 = vpop.f32.mrf.mxu0 }
 0x211   : > { %v1582_v40 = vadd.f32 %v1581_v12, %v1252_v37  ;;  %1898 = vst.msk [vmem:[%s2929_s11 + $0x360] sm:$0xff] %vm1789_vm3, %v1740_v39 }
 0x213   : > { %1835 = vst.msk [vmem:[%s2929_s11 + $0x168] sm:$0xff] %vm1789_vm3, %v1582_v40 }
 0x214   : > { %v1751_v57 = vpop.f32.mrf.mxu3 }
 0x216   : > { %v1589_v48 = vpop.f32.mrf.mxu1  ;;  %v1412_v50 = vpop.f32.mrf.mxu2 }
 0x217   : > { %v1742_v53 = vadd.f32 %v3422_v3, %v1412_v50 }
 0x218   : > { %v1255_v51 = vpop.f32.mrf.mxu0 }
 0x219   : > { %2564 = vmatmul.msk.bf16.gmra.mxu1 %vm931_vm2, %v2247_v45  ;;  %v1585_v56 = vadd.f32 %v1584_v25, %v1255_v51  ;;  %1899 = vst.msk [vmem:[%s2929_s11 + $0x368] sm:$0xff] %vm1789_vm3, %v1742_v53 }
 0x21b   : > { %1836 = vst.msk [vmem:[%s2929_s11 + $0x170] sm:$0xff] %vm1789_vm3, %v1585_v56  ;;  %1294 = vmatmul.bf16.gmra.mxu0 %v2235_v52  ;;  %1454 = vmatmul.bf16.gmra.mxu2 %v2491_v54 }
 0x21c   : > { %v1754_v61 = vpop.f32.mrf.mxu3 }
 0x21e   : > { %v1591_v58 = vpop.f32.mrf.mxu1  ;;  %v1415_v59 = vpop.f32.mrf.mxu2 }
 0x21f   : > { %v1745_v55 = vadd.f32 %v1744_v15, %v1415_v59 }
 0x220   : > { %v1257_v60 = vpop.f32.mrf.mxu0 }
 0x221   : > { %v1587_v62 = vadd.f32 %v1586_v36, %v1257_v60  ;;  %1900 = vst.msk [vmem:[%s2929_s11 + $0x370] sm:$0xff] %vm1789_vm3, %v1745_v55 }
 0x223   : > { %1837 = vst.msk [vmem:[%s2929_s11 + $0x178] sm:$0xff] %vm1789_vm3, %v1587_v62 }
 0x224   : > { %v1756_v6 = vpop.f32.mrf.mxu3 }
 0x226   : > { %v1594_v63 = vpop.f32.mrf.mxu1  ;;  %v1417_v0 = vpop.f32.mrf.mxu2 }
 0x227   : > { %v1747_v2 = vadd.f32 %v1746_v27, %v1417_v0 }
 0x228   : > { %v1260_v3 = vpop.f32.mrf.mxu0 }
 0x229   : > { %v1590_v4 = vadd.f32 %v1589_v48, %v1260_v3  ;;  %1901 = vst.msk [vmem:[%s2929_s11 + $0x378] sm:$0xff] %vm1789_vm3, %v1747_v2 }
 0x22b   : > { %1838 = vst.msk [vmem:[%s2929_s11 + $0x180] sm:$0xff] %vm1789_vm3, %v1590_v4 }
 0x22c   : > { %v1759_v17 = vpop.f32.mrf.mxu3 }
 0x22e   : > { %v1596_v5 = vpop.f32.mrf.mxu1  ;;  %v1420_v1 = vpop.f32.mrf.mxu2 }
 0x22f   : > { %v1750_v8 = vadd.f32 %v1749_v44, %v1420_v1 }
 0x230   : > { %v1262_v9 = vpop.f32.mrf.mxu0 }
 0x231   : > { %v1592_v7 = vadd.f32 %v1591_v58, %v1262_v9  ;;  %1902 = vst.msk [vmem:[%s2929_s11 + $0x380] sm:$0xff] %vm1789_vm3, %v1750_v8 }
 0x233   : > { %1839 = vst.msk [vmem:[%s2929_s11 + $0x188] sm:$0xff] %vm1789_vm3, %v1592_v7 }
 0x234   : > { %v1761_v23 = vpop.f32.mrf.mxu3 }
 0x236   : > { %v1599_v10 = vpop.f32.mrf.mxu1  ;;  %v1422_v13 = vpop.f32.mrf.mxu2 }
 0x237   : > { %v1752_v14 = vadd.f32 %v1751_v57, %v1422_v13 }
 0x238   : > { %v1265_v12 = vpop.f32.mrf.mxu0 }
 0x239   : > { %v1595_v15 = vadd.f32 %v1594_v63, %v1265_v12  ;;  %1903 = vst.msk [vmem:[%s2929_s11 + $0x388] sm:$0xff] %vm1789_vm3, %v1752_v14 }
 0x23b   : > { %1840 = vst.msk [vmem:[%s2929_s11 + $0x190] sm:$0xff] %vm1789_vm3, %v1595_v15 }
 0x23c   : > { %v1764_v32 = vpop.f32.mrf.mxu3 }
 0x23e   : > { %v1601_v18 = vpop.f32.mrf.mxu1  ;;  %v1425_v19 = vpop.f32.mrf.mxu2 }
 0x23f   : > { %v1755_v20 = vadd.f32 %v1754_v61, %v1425_v19 }
 0x240   : > { %v1267_v16 = vpop.f32.mrf.mxu0 }
 0x241   : > { %v1597_v21 = vadd.f32 %v1596_v5, %v1267_v16  ;;  %1904 = vst.msk [vmem:[%s2929_s11 + $0x390] sm:$0xff] %vm1789_vm3, %v1755_v20 }
 0x243   : > { %1841 = vst.msk [vmem:[%s2929_s11 + $0x198] sm:$0xff] %vm1789_vm3, %v1597_v21 }
 0x244   : > { %v1766_v38 = vpop.f32.mrf.mxu3 }
 0x246   : > { %v1604_v24 = vpop.f32.mrf.mxu1  ;;  %v1427_v22 = vpop.f32.mrf.mxu2 }
 0x247   : > { %v1757_v25 = vadd.f32 %v1756_v6, %v1427_v22 }
 0x248   : > { %v1270_v28 = vpop.f32.mrf.mxu0 }
 0x249   : > { %v1600_v29 = vadd.f32 %v1599_v10, %v1270_v28  ;;  %1905 = vst.msk [vmem:[%s2929_s11 + $0x398] sm:$0xff] %vm1789_vm3, %v1757_v25 }
 0x24b   : > { %1842 = vst.msk [vmem:[%s2929_s11 + $0x1a0] sm:$0xff] %vm1789_vm3, %v1600_v29 }
 0x24c   : > { %v1769_v46 = vpop.f32.mrf.mxu3 }
 0x24e   : > { %v1606_v30 = vpop.f32.mrf.mxu1  ;;  %v1430_v27 = vpop.f32.mrf.mxu2 }
 0x24f   : > { %v1760_v33 = vadd.f32 %v1759_v17, %v1430_v27 }
 0x250   : > { %v1272_v34 = vpop.f32.mrf.mxu0 }
 0x251   : > { %v1602_v35 = vadd.f32 %v1601_v18, %v1272_v34  ;;  %1906 = vst.msk [vmem:[%s2929_s11 + $0x3a0] sm:$0xff] %vm1789_vm3, %v1760_v33 }
 0x253   : > { %1843 = vst.msk [vmem:[%s2929_s11 + $0x1a8] sm:$0xff] %vm1789_vm3, %v1602_v35 }
 0x254   : > { %v1771_v53 = vpop.f32.mrf.mxu3 }
 0x256   : > { %v1609_v31 = vpop.f32.mrf.mxu1  ;;  %v1432_v36 = vpop.f32.mrf.mxu2 }
 0x257   : > { %v1762_v39 = vadd.f32 %v1761_v23, %v1432_v36 }
 0x258   : > { %v1275_v37 = vpop.f32.mrf.mxu0 }
 0x259   : > { %v1605_v40 = vadd.f32 %v1604_v24, %v1275_v37  ;;  %1907 = vst.msk [vmem:[%s2929_s11 + $0x3a8] sm:$0xff] %vm1789_vm3, %v1762_v39 }
 0x25b   : > { %1844 = vst.msk [vmem:[%s2929_s11 + $0x1b0] sm:$0xff] %vm1789_vm3, %v1605_v40 }
 0x25c   : > { %v1774_v55 = vpop.f32.mrf.mxu3 }
 0x25e   : > { %v1611_v42 = vpop.f32.mrf.mxu1  ;;  %v1435_v43 = vpop.f32.mrf.mxu2 }
 0x25f   : > { %v1765_v44 = vadd.f32 %v1764_v32, %v1435_v43 }
 0x260   : > { %v1277_v45 = vpop.f32.mrf.mxu0 }
 0x261   : > { %v1607_v41 = vadd.f32 %v1606_v30, %v1277_v45  ;;  %1908 = vst.msk [vmem:[%s2929_s11 + $0x3b0] sm:$0xff] %vm1789_vm3, %v1765_v44 }
 0x263   : > { %1845 = vst.msk [vmem:[%s2929_s11 + $0x1b8] sm:$0xff] %vm1789_vm3, %v1607_v41 }
 0x264   : > { %v1776_v3 = vpop.f32.mrf.mxu3 }
 0x266   : > { %v1614_v48 = vpop.f32.mrf.mxu1  ;;  %v1437_v49 = vpop.f32.mrf.mxu2 }
 0x267   : > { %v1767_v47 = vadd.f32 %v1766_v38, %v1437_v49 }
 0x268   : > { %v1280_v50 = vpop.f32.mrf.mxu0 }
 0x269   : > { %v1610_v52 = vadd.f32 %v1609_v31, %v1280_v50  ;;  %1909 = vst.msk [vmem:[%s2929_s11 + $0x3b8] sm:$0xff] %vm1789_vm3, %v1767_v47 }
 0x26b   : > { %1846 = vst.msk [vmem:[%s2929_s11 + $0x1c0] sm:$0xff] %vm1789_vm3, %v1610_v52 }
 0x26c   : > { %v1779_v10 = vpop.f32.mrf.mxu3 }
 0x26e   : > { %v1616_v51 = vpop.f32.mrf.mxu1  ;;  %v1440_v54 = vpop.f32.mrf.mxu2 }
 0x26f   : > { %v1770_v56 = vadd.f32 %v1769_v46, %v1440_v54 }
 0x270   : > { %v1282_v57 = vpop.f32.mrf.mxu0 }
 0x271   : > { %v1612_v58 = vadd.f32 %v1611_v42, %v1282_v57  ;;  %1910 = vst.msk [vmem:[%s2929_s11 + $0x3c0] sm:$0xff] %vm1789_vm3, %v1770_v56 }
 0x273   : > { %1847 = vst.msk [vmem:[%s2929_s11 + $0x1c8] sm:$0xff] %vm1789_vm3, %v1612_v58 }
 0x274   : > { %v1781_v19 = vpop.f32.mrf.mxu3 }
 0x276   : > { %v1619_v59 = vpop.f32.mrf.mxu1  ;;  %v1442_v60 = vpop.f32.mrf.mxu2 }
 0x277   : > { %v1772_v62 = vadd.f32 %v1771_v53, %v1442_v60 }
 0x278   : > { %v1285_v63 = vpop.f32.mrf.mxu0 }
 0x279   : > { %v1615_v61 = vadd.f32 %v1614_v48, %v1285_v63  ;;  %1911 = vst.msk [vmem:[%s2929_s11 + $0x3c8] sm:$0xff] %vm1789_vm3, %v1772_v62 }
 0x27b   : > { %1848 = vst.msk [vmem:[%s2929_s11 + $0x1d0] sm:$0xff] %vm1789_vm3, %v1615_v61 }
 0x27c   : > { %v1784_v25 = vpop.f32.mrf.mxu3 }
 0x27e   : > { %v1621_v0 = vpop.f32.mrf.mxu1  ;;  %v1445_v2 = vpop.f32.mrf.mxu2 }
 0x27f   : > { %v1775_v4 = vadd.f32 %v1774_v55, %v1445_v2 }
 0x280   : > { %v1287_v5 = vpop.f32.mrf.mxu0 }
 0x281   : > { %v1617_v1 = vadd.f32 %v1616_v51, %v1287_v5  ;;  %1912 = vst.msk [vmem:[%s2929_s11 + $0x3d0] sm:$0xff] %vm1789_vm3, %v1775_v4 }
 0x283   : > { %1849 = vst.msk [vmem:[%s2929_s11 + $0x1d8] sm:$0xff] %vm1789_vm3, %v1617_v1 }
 0x284   : > { %v1786_v33 = vpop.f32.mrf.mxu3 }
 0x286   : > { %v1624_v6 = vpop.f32.mrf.mxu1  ;;  %v1447_v8 = vpop.f32.mrf.mxu2 }
 0x287   : > { %v1777_v9 = vadd.f32 %v1776_v3, %v1447_v8 }
 0x288   : > { %v1290_v7 = vpop.f32.mrf.mxu0 }
 0x289   : > { %v1620_v13 = vadd.f32 %v1619_v59, %v1290_v7  ;;  %1913 = vst.msk [vmem:[%s2929_s11 + $0x3d8] sm:$0xff] %vm1789_vm3, %v1777_v9 }
 0x28b   : > { %1850 = vst.msk [vmem:[%s2929_s11 + $0x1e0] sm:$0xff] %vm1789_vm3, %v1620_v13 }
 0x28e   : > { %v1626_v14 = vpop.f32.mrf.mxu1  ;;  %v1450_v12 = vpop.f32.mrf.mxu2 }
 0x28f   : > { %v1780_v15 = vadd.f32 %v1779_v10, %v1450_v12 }
 0x290   : > { %v1292_v17 = vpop.f32.mrf.mxu0 }
 0x291   : > { %v1622_v18 = vadd.f32 %v1621_v0, %v1292_v17  ;;  %1914 = vst.msk [vmem:[%s2929_s11 + $0x3e0] sm:$0xff] %vm1789_vm3, %v1780_v15 }
 0x293   : > { %1851 = vst.msk [vmem:[%s2929_s11 + $0x1e8] sm:$0xff] %vm1789_vm3, %v1622_v18 }
 0x296   : > { %v1629_v20 = vpop.f32.mrf.mxu1  ;;  %v1452_v21 = vpop.f32.mrf.mxu2 }
 0x297   : > { %v1630_v16 = vadd.f32 %v1629_v20, %v2936_v11  ;;  %v1782_v23 = vadd.f32 %v1781_v19, %v1452_v21 }
 0x298   : > { %v1295_v24 = vpop.f32.mrf.mxu0 }
 0x299   : > { %1854 = vst.msk [vmem:[%s2929_s11 + $0x200] sm:$0xff] %vm1789_vm3, %v1630_v16  ;;  %v1625_v22 = vadd.f32 %v1624_v6, %v1295_v24 }
 0x29a   : > { %1915 = vst.msk [vmem:[%s2929_s11 + $0x3e8] sm:$0xff] %vm1789_vm3, %v1782_v23 }
 0x29b   : > { %1852 = vst.msk [vmem:[%s2929_s11 + $0x1f0] sm:$0xff] %vm1789_vm3, %v1625_v22 }
 0x29e   : > { %v1631_v28 = vpop.f32.mrf.mxu1  ;;  %v1455_v30 = vpop.f32.mrf.mxu2 }
 0x29f   : > { %v1632_v29 = vadd.f32 %v1631_v28, %v2950_v26  ;;  %v1785_v11 = vadd.f32 %v1784_v25, %v1455_v30 }
 0x2a0   : > { %v1297_v32 = vpop.f32.mrf.mxu0 }
 0x2a1   : > { %1855 = vst.msk [vmem:[%s2929_s11 + $0x208] sm:$0xff] %vm1789_vm3, %v1632_v29  ;;  %v1627_v27 = vadd.f32 %v1626_v14, %v1297_v32 }
 0x2a2   : > { %1916 = vst.msk [vmem:[%s2929_s11 + $0x3f0] sm:$0xff] %vm1789_vm3, %v1785_v11 }
 0x2a3   : > { %1853 = vst.msk [vmem:[%s2929_s11 + $0x1f8] sm:$0xff] %vm1789_vm3, %v1627_v27 }
 0x2a6   : > { %v1457_v34 = vpop.f32.mrf.mxu2 }
 0x2a7   : > { %v1787_v35 = vadd.f32 %v1786_v33, %v1457_v34 }
 0x2a9   : > { %1917 = vst.msk [vmem:[%s2929_s11 + $0x3f8] sm:$0xff] %vm1789_vm3, %v1787_v35 }
 0x2aa PF: > { %s12_s9 = sadd.s32 1, %s2761_s9  }
 0x2ab   : > { %p9_p4 = scmp.ge.s32.totalorder %s12_s9, 4  }
 0x2ad   :  { %11 = sbr.rel (!%p9_p4) target bundleno = 1 (0x1), region = 58 }

</bundles_post_ra>
